<compile_context>
chip_gen: v6e
topology: v6e:2x2x1
jax: 0.10.0
libtpu: 0.0.40
codegen_flags: <defaults>
</compile_context>

<pallas_src>
import numpy as np
import jax
import jax.numpy as jnp
from jax import lax
from jax.experimental import pallas as pl
from jax.experimental.pallas import tpu as pltpu

BINS = 50
FOCAL_BETA = 20.0
FOCAL_GAMMA = 1          # gamma == 1 -> the power is the identity
LN_EPS = 1e-5


# ----------------------------------------------------------------------------
# Pallas kernel factory: one grid step = n_tile span rows, gathered in-kernel
# ----------------------------------------------------------------------------
def _make_kernel(D, H, n_tile, n_chunks):
    rows_c = n_tile // n_chunks
    inv_h = 1.0 / float(H)

    def kernel(idx_ref,        # [2, N_pad] int32 SMEM (scalar prefetch): start/end rows
               sent_ref,       # [B*L, D]   HBM (pl.ANY)
               w1_ref,         # [2D, H]    VMEM resident
               b1_ref,         # [1, H]     f32
               gw2c_ref,       # [1, H]     f32  (ln_g*w2 centred)
               c_ref,          # [1, 1]     f32  (w2·ln_b + b2)
               aux_ref,        # [n_tile,2] f32  (col0 label, col1 LDS weight; 0 on pad)
               out_ref,        # [n_tile,2] f32  (col0 logits, col1 per-elem loss)
               x_buf,          # [2*n_tile, D] VMEM scratch (rows 0..n_tile-1: starts)
               sem):           # DMA sems, one per gather chunk
        t = pl.program_id(0)
        base = t * n_tile

        def gather_chunk(c):
            row0 = c * rows_c

            @pl.loop(0, rows_c)
            def _(r):
                row = row0 + r
                s = idx_ref[0, base + row]
                e = idx_ref[1, base + row]
                pltpu.make_async_copy(sent_ref.at[pl.ds(s, 1)],
                                      x_buf.at[pl.ds(row, 1)],
                                      sem.at[c]).start()
                pltpu.make_async_copy(sent_ref.at[pl.ds(e, 1)],
                                      x_buf.at[pl.ds(n_tile + row, 1)],
                                      sem.at[c]).start()

        def wait_chunk(c):
            # All copies on sem[c] have identical (1, D) shape; wait once per copy.
            @pl.loop(0, 2 * rows_c)
            def _(r):
                pltpu.make_async_copy(sent_ref.at[pl.ds(0, 1)],
                                      x_buf.at[pl.ds(0, 1)],
                                      sem.at[c]).wait()

        # Resident small operands (loaded once per grid step).
        w1a = w1_ref[:D, :]
        w1b = w1_ref[D:, :]
        b1 = b1_ref[...]
        gw2c = gw2c_ref[...]
        cc = c_ref[...]

        def compute_chunk(c):
            lo = c * rows_c
            hi = lo + rows_c
            x0 = x_buf[lo:hi, :]                               # start embeddings
            x1 = x_buf[n_tile + lo:n_tile + hi, :]             # end embeddings
            # Linear (split over the two endpoint halves of W1) + bias + tanh.
            h = jnp.dot(x0, w1a, preferred_element_type=jnp.float32)
            h = h + jnp.dot(x1, w1b, preferred_element_type=jnp.float32)
            h = jnp.tanh(h + b1)                               # [rows_c, H] f32

            # Folded LayerNorm + final projection (hn never materialised):
            #   logits = rsqrt(var+eps) * sum_H(h * gw2c) + (w2·ln_b + b2)
            s1 = jnp.sum(h, axis=1, keepdims=True)
            s2 = jnp.sum(h * h, axis=1, keepdims=True)
            s3 = jnp.sum(h * gw2c, axis=1, keepdims=True)
            mu = s1 * inv_h
            var = jnp.maximum(s2 * inv_h - mu * mu, 0.0)       # clamp (f32 cancellation)
            logit = lax.rsqrt(var + LN_EPS) * s3 + cc          # [rows_c, 1]

            # weighted_focal_l1_loss (activate='sigmoid', beta=20):
            #   smooth_l1(d) * (2*sigmoid(beta*|d|) - 1)^gamma * weights
            # 2*sigmoid(b*a) - 1 == tanh(b*a/2).
            lab = aux_ref[lo:hi, 0:1]
            lw = aux_ref[lo:hi, 1:2]
            diff = logit - lab
            ad = jnp.abs(diff)
            sl1 = jnp.where(ad < 1.0, 0.5 * diff * diff, ad - 0.5)
            focal = jnp.tanh((0.5 * FOCAL_BETA) * ad)
            if FOCAL_GAMMA != 1:
                focal = focal ** FOCAL_GAMMA
            out_ref[lo:hi, 0:1] = logit
            out_ref[lo:hi, 1:2] = sl1 * focal * lw             # 0 on masked / padded rows

        # Software pipeline inside the step: prefetch chunk c+1 while computing c.
        gather_chunk(0)
        for c in range(n_chunks):
            if c + 1 < n_chunks:
                gather_chunk(c + 1)
            wait_chunk(c)
            compute_chunk(c)

    return kernel


# ----------------------------------------------------------------------------
# LDS gaussian kernel window (reproduces get_lds_kernel_window('gaussian', 5, 2))
# ----------------------------------------------------------------------------
def _gaussian_lds_window(ks=5, sigma=2.0, truncate=4.0):
    half_ks = (ks - 1) // 2
    base = np.zeros(ks, dtype=np.float64)
    base[half_ks] = 1.0
    lw = int(truncate * sigma + 0.5)
    i = np.arange(-lw, lw + 1)
    g = np.exp(-0.5 * (i / sigma) ** 2)
    g = g / g.sum()
    xp = np.pad(base, lw, mode="symmetric")     # scipy 'reflect' == numpy 'symmetric'
    out = np.array([np.dot(xp[j:j + 2 * lw + 1], g) for j in range(ks)])
    return (out / out.max()).astype(np.float32)


def _lds_weights(lab_flat, m_flat):
    """LDS re-weighting of the labels (0 on masked rows)."""
    mask_f = m_flat.astype(jnp.float32)
    n_valid = jnp.sum(mask_f)
    bin_w = 6.0 / BINS
    bin_idx = jnp.clip(jnp.floor((lab_flat + 3.0) / bin_w), 0, BINS - 1).astype(jnp.int32)
    emp = jnp.zeros((BINS,), jnp.float32).at[bin_idx].add(mask_f)   # valid-row histogram
    window = jnp.asarray(_gaussian_lds_window(ks=5, sigma=2.0))
    # Symmetric centred window -> equals scipy convolve1d(..., mode='constant').
    eff = jnp.convolve(emp, window, mode="same")
    eff_per = eff[bin_idx]
    inv = jnp.where(m_flat, 1.0 / jnp.maximum(eff_per, 1e-12), 0.0)
    scaling = n_valid / jnp.maximum(jnp.sum(inv), 1e-12)
    return inv * scaling


# ----------------------------------------------------------------------------
# Forward pass wrapper
# ----------------------------------------------------------------------------
def factuality_forward(sent_embs, span1s, labels, params, *, n_tile=None):
    B, L, D = sent_embs.shape
    T = span1s.shape[1]
    N = B * T
    two_d = 2 * D
    H = params["w1"].shape[1]
    x_dtype = sent_embs.dtype            # pass bf16 embeddings to get bf16 MXU matmuls
    x_bytes = jnp.dtype(x_dtype).itemsize
    n_chunks = 2

    span_mask = span1s[:, :, 0] != -1                      # [B, T]
    m_flat = span_mask.reshape(N)
    n_valid = jnp.sum(m_flat.astype(jnp.float32))

    # ---- generation-aware tile / VMEM sizing --------------------------------
    try:
        vmem_cap = int(pltpu.get_tpu_info().vmem_capacity_bytes)
    except Exception:
        vmem_cap = 64 << 20                                # conservative (v7x per-core)

    if n_tile is None:
        n_tile = 1024 if vmem_cap >= (100 << 20) else 512  # v5e/v6e vs v7x
    n_tile = max(128, (int(n_tile) // 128) * 128)
    n128 = ((N + 127) // 128) * 128
    if n128 <= 128:
        n_tile, n_pad = 128, 128
    else:
        # >= 2 tiles, even count -> both v7x TensorCores get work on the parallel axis.
        n_tile = min(n_tile, max(128, ((n128 // 2) // 128) * 128))
        n_pad = -(-N // (2 * n_tile)) * (2 * n_tile)
    num_tiles = n_pad // n_tile
    rows_c = n_tile // n_chunks

    # ---- span endpoint row indices (gather itself happens inside the kernel) --
    sent_flat = sent_embs.reshape(B * L, D)                # free reshape, stays in HBM
    row_base = (jnp.arange(B, dtype=jnp.int32) * L)[:, None]
    s_tok = jnp.clip(span1s[:, :, 0], 0, L - 1).astype(jnp.int32)
    e_tok = jnp.clip(span1s[:, :, 1], 0, L - 1).astype(jnp.int32)
    # Masked spans gather token 0 (their logits are unused; loss weight is 0 there).
    s_row = jnp.where(span_mask, row_base + s_tok, 0).reshape(N)
    e_row = jnp.where(span_mask, row_base + e_tok, 0).reshape(N)
    idx = jnp.zeros((2, n_pad), jnp.int32)
    idx = idx.at[0, :N].set(s_row).at[1, :N].set(e_row)

    # ---- LDS label re-weighting (tiny O(N) wrapper work) ---------------------
    lab_flat = labels.reshape(N).astype(jnp.float32)
    lds_w = _lds_weights(lab_flat, m_flat)
    aux = jnp.zeros((n_pad, 2), jnp.float32)
    aux = aux.at[:N, 0].set(lab_flat).at[:N, 1].set(lds_w)

    # ---- params: fold LayerNorm + final projection ---------------------------
    # NOTE: H should ideally be an MXU-sized multiple (128/256) in production; it
    # cannot be zero-padded here because LayerNorm statistics run over H.
    w1_k = params["w1"].astype(x_dtype)                    # [2D, H]
    b1_k = params["b1"].reshape(1, H).astype(jnp.float32)
    g = params["ln_g"].reshape(1, H).astype(jnp.float32)
    be = params["ln_b"].reshape(1, H).astype(jnp.float32)
    w2 = params["w2"].reshape(1, H).astype(jnp.float32)
    b2 = params["b2"].reshape(1, 1).astype(jnp.float32)
    gw2 = g * w2
    gw2c_k = gw2 - jnp.mean(gw2, axis=1, keepdims=True)    # folds "- mu * sum(g*w2)"
    c_k = jnp.sum(w2 * be, axis=1, keepdims=True) + b2     # [1, 1]

    # ---- VMEM budget / limit --------------------------------------------------
    vmem_budget = (
        2 * n_tile * D * x_bytes                 # gather scratch
        + two_d * H * x_bytes                    # resident W1
        + (3 * H + 8) * 4                        # b1 / gw2c / c
        + 2 * (n_tile * 2 * 4) * 2               # aux + out, double buffered
        + 4 * rows_c * H * 4                     # h + elementwise f32 temps
    )
    vmem_limit = max(4 * vmem_budget, 32 << 20)
    vmem_limit = min(vmem_limit, int(0.75 * vmem_cap))
    vmem_limit = int(max(vmem_limit, min(vmem_budget + (4 << 20), int(0.9 * vmem_cap))))

    cost = pl.CostEstimate(
        flops=2 * n_pad * two_d * H + 10 * n_pad * H,
        transcendentals=n_pad * (H + 2),
        bytes_accessed=int(2 * n_pad * D * x_bytes + two_d * H * x_bytes
                           + 4 * n_pad * 4),
    )

    kernel = _make_kernel(D, H, n_tile, n_chunks)
    const = lambda i, idx_ref: (0, 0)
    row_tile = lambda i, idx_ref: (i, 0)

    out = pl.pallas_call(
        kernel,
        grid_spec=pltpu.PrefetchScalarGridSpec(
            num_scalar_prefetch=1,
            grid=(num_tiles,),
            in_specs=[
                pl.BlockSpec(memory_space=pl.ANY),          # sent_flat (HBM, gathered)
                pl.BlockSpec((two_d, H), const),            # W1 (VMEM resident)
                pl.BlockSpec((1, H), const),                # b1
                pl.BlockSpec((1, H), const),                # ln_g*w2 (centred)
                pl.BlockSpec((1, 1), const),                # w2·ln_b + b2
                pl.BlockSpec((n_tile, 2), row_tile),        # labels + LDS weights
            ],
            out_specs=pl.BlockSpec((n_tile, 2), row_tile),  # [logits, per-elem loss]
            scratch_shapes=[
                pltpu.VMEM((2 * n_tile, D), x_dtype),
                pltpu.SemaphoreType.DMA((n_chunks,)),
            ],
        ),
        out_shape=jax.ShapeDtypeStruct((n_pad, 2), jnp.float32),
        compiler_params=pltpu.CompilerParams(
            dimension_semantics=("parallel",),
            vmem_limit_bytes=vmem_limit),
        cost_estimate=cost,
    )(idx, sent_flat, w1_k, b1_k, gw2c_k, c_k, aux)

    raw_logits = out[:N, 0].reshape(B, T, 1)
    n_targets = jnp.sum(span_mask)
    return {
        "preds": [],                                        # filled only when predict=True
        "logits": raw_logits,
        "n_inputs": B,
        "n_targets": n_targets,
        "n_exs": n_targets,
        "mask": span_mask,
        # torch.mean over the selected (valid) targets; padded/masked rows are 0.
        "loss": jnp.sum(out[:, 1]) / jnp.maximum(n_valid, 1.0),
    }
    # TODO(synk): task.update_metrics / unbind_predictions are host-side bookkeeping.


# ----------------------------------------------------------------------------
# Pure-JAX reference (for validation of the fused kernel path)
# ----------------------------------------------------------------------------
def _reference_forward(sent_embs, span1s, labels, params):
    B, L, D = sent_embs.shape
    mask = span1s[:, :, 0] != -1
    s_tok = jnp.where(mask, jnp.clip(span1s[:, :, 0], 0, L - 1), 0)
    e_tok = jnp.where(mask, jnp.clip(span1s[:, :, 1], 0, L - 1), 0)
    se = jnp.take_along_axis(sent_embs, s_tok[:, :, None], axis=1)
    ee = jnp.take_along_axis(sent_embs, e_tok[:, :, None], axis=1)
    x = jnp.concatenate([se, ee], axis=-1)                  # [B, T, 2D]
    h = jnp.tanh(x @ params["w1"] + params["b1"].reshape(-1))
    mu = jnp.mean(h, axis=-1, keepdims=True)
    var = jnp.mean((h - mu) ** 2, axis=-1, keepdims=True)
    hn = ((h - mu) / jnp.sqrt(var + LN_EPS) * params["ln_g"].reshape(-1)
          + params["ln_b"].reshape(-1))
    logits = hn @ params["w2"].reshape(-1, 1) + params["b2"].reshape(-1)   # [B, T, 1]

    lw = _lds_weights(labels.reshape(-1), mask.reshape(-1)).reshape(mask.shape)
    d = logits[..., 0] - labels
    ad = jnp.abs(d)
    sl1 = jnp.where(ad < 1.0, 0.5 * d * d, ad - 0.5)
    focal = jnp.tanh(0.5 * FOCAL_BETA * ad)
    per = sl1 * focal * lw
    loss = jnp.sum(jnp.where(mask, per, 0.0)) / jnp.maximum(jnp.sum(mask), 1)
    return logits, mask, loss


# ----------------------------------------------------------------------------
if __name__ == "__main__":
    key = jax.random.PRNGKey(0)
    B, L, D, T, H = 2, 16, 128, 8, 32
    k1, k2, k3, k4, k5, k6, k7 = jax.random.split(key, 7)

    sent_embs = jax.random.normal(k1, (B, L, D), jnp.float32)
    starts = jax.random.randint(k2, (B, T), 0, L - 1)
    ends = jnp.minimum(starts + jax.random.randint(k3, (B, T), 0, 3), L - 1)
    span1s = jnp.stack([starts, ends], axis=-1).astype(jnp.int32)
    invalid = jax.random.bernoulli(k4, 0.25, (B, T))          # padded targets -> -1
    span1s = jnp.where(invalid[:, :, None], -1, span1s)
    labels = jax.random.uniform(k5, (B, T), jnp.float32, -3.0, 3.0)

    params = {
        "w1": 0.1 * jax.random.normal(k6, (2 * D, H), jnp.float32),
        "b1": jnp.zeros((1, H), jnp.float32),
        "ln_g": jnp.ones((1, H), jnp.float32),
        "ln_b": jnp.zeros((1, H), jnp.float32),
        "w2": 0.1 * jax.random.normal(k7, (1, H), jnp.float32),  # n_classes = 1
        "b2": jnp.zeros((1, 1), jnp.float32),
    }

    out = factuality_forward(sent_embs, span1s, labels, params)
    jax.block_until_ready((out["loss"], out["logits"]))

    ref_logits, ref_mask, ref_loss = _reference_forward(sent_embs, span1s, labels, params)
    m = np.asarray(ref_mask)
    np.testing.assert_allclose(np.asarray(out["logits"][..., 0])[m],
                               np.asarray(ref_logits[..., 0])[m],
                               rtol=2e-3, atol=2e-3)
    np.testing.assert_allclose(float(out["loss"]), float(ref_loss),
                               rtol=2e-3, atol=2e-3)
    print("KERNEL_OK")
</pallas_src>

<mosaic_0001>
module attributes {stable_mosaic.version = 11 : i64} {
  func.func @kernel(%arg0: i32, %arg1: memref<2x128xi32, #tpu.memory_space<smem>>, %arg2: memref<32x128xf32, #tpu.memory_space<any>>, %arg3: memref<256x32xf32, #tpu.memory_space<vmem>>, %arg4: memref<1x32xf32, #tpu.memory_space<vmem>>, %arg5: memref<1x32xf32, #tpu.memory_space<vmem>>, %arg6: memref<1x1xf32, #tpu.memory_space<vmem>>, %arg7: memref<128x2xf32, #tpu.memory_space<vmem>>, %arg8: memref<128x2xf32, #tpu.memory_space<vmem>>, %arg9: memref<256x128xf32, #tpu.memory_space<vmem>>, %arg10: memref<2x!tpu.dma_semaphore, #tpu.memory_space<semaphore_mem>>) attributes {dimension_semantics = [#tpu.dimension_semantics<parallel>], iteration_bounds = array<i64: 1>, scalar_prefetch = 1 : i64, scratch_operands = 2 : i64, tpu.core_type = #tpu.core_type<tc>, window_params = [{}, {pipeline_mode = #tpu.pipeline_mode<synchronous>, transform_indices = @transform_1, window_bounds = array<i64: 256, 32>}, {pipeline_mode = #tpu.pipeline_mode<synchronous>, transform_indices = @transform_2, window_bounds = array<i64: 1, 32>}, {pipeline_mode = #tpu.pipeline_mode<synchronous>, transform_indices = @transform_3, window_bounds = array<i64: 1, 32>}, {pipeline_mode = #tpu.pipeline_mode<synchronous>, transform_indices = @transform_4, window_bounds = array<i64: 1, 1>}, {transform_indices = @transform_5, window_bounds = array<i64: 128, 2>}, {transform_indices = @transform_6, window_bounds = array<i64: 128, 2>}]} {
    %c128_i32 = arith.constant 128 : i32
    %0 = arith.muli %arg0, %c128_i32 : i32
    %c0 = arith.constant 0 : index
    %c0_0 = arith.constant 0 : index
    %1 = vector.load %arg3[%c0, %c0_0] : memref<256x32xf32, #tpu.memory_space<vmem>>, vector<128x32xf32>
    %c128 = arith.constant 128 : index
    %c0_1 = arith.constant 0 : index
    %2 = vector.load %arg3[%c128, %c0_1] : memref<256x32xf32, #tpu.memory_space<vmem>>, vector<128x32xf32>
    %c0_2 = arith.constant 0 : index
    %c0_3 = arith.constant 0 : index
    %3 = vector.load %arg4[%c0_2, %c0_3] : memref<1x32xf32, #tpu.memory_space<vmem>>, vector<1x32xf32>
    %c0_4 = arith.constant 0 : index
    %c0_5 = arith.constant 0 : index
    %4 = vector.load %arg5[%c0_4, %c0_5] : memref<1x32xf32, #tpu.memory_space<vmem>>, vector<1x32xf32>
    %c0_6 = arith.constant 0 : index
    %c0_7 = arith.constant 0 : index
    %5 = vector.load %arg6[%c0_6, %c0_7] : memref<1x1xf32, #tpu.memory_space<vmem>>, vector<1x1xf32>
    %c0_i32 = arith.constant 0 : i32
    %c64_i32 = arith.constant 64 : i32
    %6 = arith.addi %c0_i32, %c64_i32 : i32
    %c1_i32 = arith.constant 1 : i32
    scf.for %arg11 = %c0_i32 to %6 step %c1_i32  : i32 {
      %c1_i32_65 = arith.constant 1 : i32
      %110 = arith.muli %arg11, %c1_i32_65 : i32
      %c0_i32_66 = arith.constant 0 : i32
      %111 = arith.addi %c0_i32_66, %110 : i32
      %c0_i32_67 = arith.constant 0 : i32
      %112 = arith.addi %c0_i32_67, %111 : i32
      %113 = arith.addi %0, %112 : i32
      %c0_68 = arith.constant 0 : index
      %114 = arith.index_cast %113 : i32 to index
      %115 = memref.load %arg1[%c0_68, %114] : memref<2x128xi32, #tpu.memory_space<smem>>
      %116 = arith.addi %0, %112 : i32
      %c1_69 = arith.constant 1 : index
      %117 = arith.index_cast %116 : i32 to index
      %118 = memref.load %arg1[%c1_69, %117] : memref<2x128xi32, #tpu.memory_space<smem>>
      %c0_i32_70 = arith.constant 0 : i32
      %c0_i32_71 = arith.constant 0 : i32
      %119 = tpu.memref_slice %arg2[%115, %c0_i32_71] : memref<32x128xf32, #tpu.memory_space<any>> -> memref<1x128xf32, #tpu.memory_space<any>>
      %c0_i32_72 = arith.constant 0 : i32
      %120 = tpu.memref_slice %arg9[%112, %c0_i32_72] : memref<256x128xf32, #tpu.memory_space<vmem>> -> memref<1x128xf32, #tpu.memory_space<vmem>>
      %121 = tpu.memref_slice %arg10[%c0_i32_70] : memref<2x!tpu.dma_semaphore, #tpu.memory_space<semaphore_mem>> -> memref<1x!tpu.dma_semaphore, #tpu.memory_space<semaphore_mem>>
      %122 = tpu.memref_squeeze %121 : memref<1x!tpu.dma_semaphore, #tpu.memory_space<semaphore_mem>> -> memref<!tpu.dma_semaphore, #tpu.memory_space<semaphore_mem>>
      tpu.enqueue_dma source(%119 : memref<1x128xf32, #tpu.memory_space<any>>) target(%120 : memref<1x128xf32, #tpu.memory_space<vmem>>) target_semaphore(%122 : memref<!tpu.dma_semaphore, #tpu.memory_space<semaphore_mem>>)
      %c128_i32_73 = arith.constant 128 : i32
      %123 = arith.addi %c128_i32_73, %112 : i32
      %c0_i32_74 = arith.constant 0 : i32
      %c0_i32_75 = arith.constant 0 : i32
      %124 = tpu.memref_slice %arg2[%118, %c0_i32_75] : memref<32x128xf32, #tpu.memory_space<any>> -> memref<1x128xf32, #tpu.memory_space<any>>
      %c0_i32_76 = arith.constant 0 : i32
      %125 = tpu.memref_slice %arg9[%123, %c0_i32_76] : memref<256x128xf32, #tpu.memory_space<vmem>> -> memref<1x128xf32, #tpu.memory_space<vmem>>
      %126 = tpu.memref_slice %arg10[%c0_i32_74] : memref<2x!tpu.dma_semaphore, #tpu.memory_space<semaphore_mem>> -> memref<1x!tpu.dma_semaphore, #tpu.memory_space<semaphore_mem>>
      %127 = tpu.memref_squeeze %126 : memref<1x!tpu.dma_semaphore, #tpu.memory_space<semaphore_mem>> -> memref<!tpu.dma_semaphore, #tpu.memory_space<semaphore_mem>>
      tpu.enqueue_dma source(%124 : memref<1x128xf32, #tpu.memory_space<any>>) target(%125 : memref<1x128xf32, #tpu.memory_space<vmem>>) target_semaphore(%127 : memref<!tpu.dma_semaphore, #tpu.memory_space<semaphore_mem>>)
    }
    %c64_i32_8 = arith.constant 64 : i32
    %c0_i32_9 = arith.constant 0 : i32
    %c64_i32_10 = arith.constant 64 : i32
    %7 = arith.addi %c0_i32_9, %c64_i32_10 : i32
    %c1_i32_11 = arith.constant 1 : i32
    scf.for %arg11 = %c0_i32_9 to %7 step %c1_i32_11  : i32 {
      %c1_i32_65 = arith.constant 1 : i32
      %110 = arith.muli %arg11, %c1_i32_65 : i32
      %c0_i32_66 = arith.constant 0 : i32
      %111 = arith.addi %c0_i32_66, %110 : i32
      %c64_i32_67 = arith.constant 64 : i32
      %112 = arith.addi %c64_i32_67, %111 : i32
      %113 = arith.addi %0, %112 : i32
      %c0_68 = arith.constant 0 : index
      %114 = arith.index_cast %113 : i32 to index
      %115 = memref.load %arg1[%c0_68, %114] : memref<2x128xi32, #tpu.memory_space<smem>>
      %116 = arith.addi %0, %112 : i32
      %c1_69 = arith.constant 1 : index
      %117 = arith.index_cast %116 : i32 to index
      %118 = memref.load %arg1[%c1_69, %117] : memref<2x128xi32, #tpu.memory_space<smem>>
      %c1_i32_70 = arith.constant 1 : i32
      %c0_i32_71 = arith.constant 0 : i32
      %119 = tpu.memref_slice %arg2[%115, %c0_i32_71] : memref<32x128xf32, #tpu.memory_space<any>> -> memref<1x128xf32, #tpu.memory_space<any>>
      %c0_i32_72 = arith.constant 0 : i32
      %120 = tpu.memref_slice %arg9[%112, %c0_i32_72] : memref<256x128xf32, #tpu.memory_space<vmem>> -> memref<1x128xf32, #tpu.memory_space<vmem>>
      %121 = tpu.memref_slice %arg10[%c1_i32_70] : memref<2x!tpu.dma_semaphore, #tpu.memory_space<semaphore_mem>> -> memref<1x!tpu.dma_semaphore, #tpu.memory_space<semaphore_mem>>
      %122 = tpu.memref_squeeze %121 : memref<1x!tpu.dma_semaphore, #tpu.memory_space<semaphore_mem>> -> memref<!tpu.dma_semaphore, #tpu.memory_space<semaphore_mem>>
      tpu.enqueue_dma source(%119 : memref<1x128xf32, #tpu.memory_space<any>>) target(%120 : memref<1x128xf32, #tpu.memory_space<vmem>>) target_semaphore(%122 : memref<!tpu.dma_semaphore, #tpu.memory_space<semaphore_mem>>)
      %c128_i32_73 = arith.constant 128 : i32
      %123 = arith.addi %c128_i32_73, %112 : i32
      %c1_i32_74 = arith.constant 1 : i32
      %c0_i32_75 = arith.constant 0 : i32
      %124 = tpu.memref_slice %arg2[%118, %c0_i32_75] : memref<32x128xf32, #tpu.memory_space<any>> -> memref<1x128xf32, #tpu.memory_space<any>>
      %c0_i32_76 = arith.constant 0 : i32
      %125 = tpu.memref_slice %arg9[%123, %c0_i32_76] : memref<256x128xf32, #tpu.memory_space<vmem>> -> memref<1x128xf32, #tpu.memory_space<vmem>>
      %126 = tpu.memref_slice %arg10[%c1_i32_74] : memref<2x!tpu.dma_semaphore, #tpu.memory_space<semaphore_mem>> -> memref<1x!tpu.dma_semaphore, #tpu.memory_space<semaphore_mem>>
      %127 = tpu.memref_squeeze %126 : memref<1x!tpu.dma_semaphore, #tpu.memory_space<semaphore_mem>> -> memref<!tpu.dma_semaphore, #tpu.memory_space<semaphore_mem>>
      tpu.enqueue_dma source(%124 : memref<1x128xf32, #tpu.memory_space<any>>) target(%125 : memref<1x128xf32, #tpu.memory_space<vmem>>) target_semaphore(%127 : memref<!tpu.dma_semaphore, #tpu.memory_space<semaphore_mem>>)
    }
    %c64_i32_12 = arith.constant 64 : i32
    %c0_i32_13 = arith.constant 0 : i32
    %c128_i32_14 = arith.constant 128 : i32
    %8 = arith.addi %c0_i32_13, %c128_i32_14 : i32
    %c1_i32_15 = arith.constant 1 : i32
    scf.for %arg11 = %c0_i32_13 to %8 step %c1_i32_15  : i32 {
      %c0_i32_65 = arith.constant 0 : i32
      %c0_i32_66 = arith.constant 0 : i32
      %c0_i32_67 = arith.constant 0 : i32
      %110 = tpu.memref_slice %arg2[%c0_i32_66, %c0_i32_67] : memref<32x128xf32, #tpu.memory_space<any>> -> memref<1x128xf32, #tpu.memory_space<any>>
      %c0_i32_68 = arith.constant 0 : i32
      %c0_i32_69 = arith.constant 0 : i32
      %111 = tpu.memref_slice %arg9[%c0_i32_68, %c0_i32_69] : memref<256x128xf32, #tpu.memory_space<vmem>> -> memref<1x128xf32, #tpu.memory_space<vmem>>
      %112 = tpu.memref_slice %arg10[%c0_i32_65] : memref<2x!tpu.dma_semaphore, #tpu.memory_space<semaphore_mem>> -> memref<1x!tpu.dma_semaphore, #tpu.memory_space<semaphore_mem>>
      %113 = tpu.memref_squeeze %112 : memref<1x!tpu.dma_semaphore, #tpu.memory_space<semaphore_mem>> -> memref<!tpu.dma_semaphore, #tpu.memory_space<semaphore_mem>>
      tpu.wait_dma2 semaphore(%113 : memref<!tpu.dma_semaphore, #tpu.memory_space<semaphore_mem>>) src(%110 : memref<1x128xf32, #tpu.memory_space<any>>) dst(%111 : memref<1x128xf32, #tpu.memory_space<vmem>>)
    }
    %c0_16 = arith.constant 0 : index
    %c0_17 = arith.constant 0 : index
    %9 = vector.load %arg9[%c0_16, %c0_17] : memref<256x128xf32, #tpu.memory_space<vmem>>, vector<64x128xf32>
    %c128_18 = arith.constant 128 : index
    %c0_19 = arith.constant 0 : index
    %10 = vector.load %arg9[%c128_18, %c0_19] : memref<256x128xf32, #tpu.memory_space<vmem>>, vector<64x128xf32>
    %cst = arith.constant dense<0.000000e+00> : vector<64x32xf32>
    %11 = tpu.matmul %9, %1, %cst {dimension_numbers = #tpu.dot_dimension_numbers<[1], [0], [0], [1], [0, 0, 1, 1], [], []>} : vector<64x128xf32>, vector<128x32xf32>, vector<64x32xf32> -> vector<64x32xf32>
    %cst_20 = arith.constant dense<0.000000e+00> : vector<64x32xf32>
    %12 = tpu.matmul %10, %2, %cst_20 {dimension_numbers = #tpu.dot_dimension_numbers<[1], [0], [0], [1], [0, 0, 1, 1], [], []>} : vector<64x128xf32>, vector<128x32xf32>, vector<64x32xf32> -> vector<64x32xf32>
    %13 = arith.addf %11, %12 : vector<64x32xf32>
    %14 = vector.broadcast %3 : vector<1x32xf32> to vector<64x32xf32>
    %15 = arith.addf %13, %14 : vector<64x32xf32>
    %16 = math.tanh %15 : vector<64x32xf32>
    %cst_21 = arith.constant dense<0.000000e+00> : vector<64xf32>
    %17 = vector.multi_reduction <add>, %16, %cst_21 [1] : vector<64x32xf32> to vector<64xf32>
    %18 = vector.shape_cast %17 : vector<64xf32> to vector<64x1xf32>
    %19 = arith.mulf %16, %16 : vector<64x32xf32>
    %cst_22 = arith.constant dense<0.000000e+00> : vector<64xf32>
    %20 = vector.multi_reduction <add>, %19, %cst_22 [1] : vector<64x32xf32> to vector<64xf32>
    %21 = vector.shape_cast %20 : vector<64xf32> to vector<64x1xf32>
    %22 = vector.broadcast %4 : vector<1x32xf32> to vector<64x32xf32>
    %23 = arith.mulf %16, %22 : vector<64x32xf32>
    %cst_23 = arith.constant dense<0.000000e+00> : vector<64xf32>
    %24 = vector.multi_reduction <add>, %23, %cst_23 [1] : vector<64x32xf32> to vector<64xf32>
    %25 = vector.shape_cast %24 : vector<64xf32> to vector<64x1xf32>
    %cst_24 = arith.constant 3.125000e-02 : f32
    %26 = vector.broadcast %cst_24 : f32 to vector<64x1xf32>
    %27 = arith.mulf %18, %26 : vector<64x1xf32>
    %cst_25 = arith.constant 3.125000e-02 : f32
    %28 = vector.broadcast %cst_25 : f32 to vector<64x1xf32>
    %29 = arith.mulf %21, %28 : vector<64x1xf32>
    %30 = arith.mulf %27, %27 : vector<64x1xf32>
    %31 = arith.subf %29, %30 : vector<64x1xf32>
    %cst_26 = arith.constant 0.000000e+00 : f32
    %32 = vector.broadcast %cst_26 : f32 to vector<64x1xf32>
    %33 = arith.maximumf %31, %32 : vector<64x1xf32>
    %cst_27 = arith.constant 9.99999974E-6 : f32
    %34 = vector.broadcast %cst_27 : f32 to vector<64x1xf32>
    %35 = arith.addf %33, %34 : vector<64x1xf32>
    %36 = math.rsqrt %35 : vector<64x1xf32>
    %37 = arith.mulf %36, %25 : vector<64x1xf32>
    %38 = vector.broadcast %5 : vector<1x1xf32> to vector<64x1xf32>
    %39 = arith.addf %37, %38 : vector<64x1xf32>
    %c0_28 = arith.constant 0 : index
    %c0_29 = arith.constant 0 : index
    %40 = vector.load %arg7[%c0_28, %c0_29] : memref<128x2xf32, #tpu.memory_space<vmem>>, vector<64x1xf32>
    %c0_30 = arith.constant 0 : index
    %c1 = arith.constant 1 : index
    %41 = vector.load %arg7[%c0_30, %c1] : memref<128x2xf32, #tpu.memory_space<vmem>>, vector<64x1xf32>
    %42 = arith.subf %39, %40 : vector<64x1xf32>
    %43 = math.absf %42 : vector<64x1xf32>
    %cst_31 = arith.constant 1.000000e+00 : f32
    %44 = vector.broadcast %cst_31 : f32 to vector<64x1xf32>
    %45 = arith.cmpf olt, %43, %44 : vector<64x1xf32>
    %cst_32 = arith.constant 5.000000e-01 : f32
    %46 = vector.broadcast %cst_32 : f32 to vector<64x1xf32>
    %47 = arith.mulf %46, %42 : vector<64x1xf32>
    %48 = arith.mulf %47, %42 : vector<64x1xf32>
    %cst_33 = arith.constant 5.000000e-01 : f32
    %49 = vector.broadcast %cst_33 : f32 to vector<64x1xf32>
    %50 = arith.subf %43, %49 : vector<64x1xf32>
    %51 = arith.select %45, %48, %50 : vector<64x1xi1>, vector<64x1xf32>
    %cst_34 = arith.constant 1.000000e+01 : f32
    %52 = vector.broadcast %cst_34 : f32 to vector<64x1xf32>
    %53 = arith.mulf %52, %43 : vector<64x1xf32>
    %54 = math.tanh %53 : vector<64x1xf32>
    %c0_35 = arith.constant 0 : index
    %c0_36 = arith.constant 0 : index
    %55 = vector.load %arg8[%c0_35, %c0_36] : memref<128x2xf32, #tpu.memory_space<vmem>>, vector<64x1xf32>
    tpu.vector_store %arg8[%c0_35, %c0_36], %39 {strides = array<i32>} : memref<128x2xf32, #tpu.memory_space<vmem>>, vector<64x1xf32>,
    %56 = arith.mulf %51, %54 : vector<64x1xf32>
    %57 = arith.mulf %56, %41 : vector<64x1xf32>
    %c0_37 = arith.constant 0 : index
    %c1_38 = arith.constant 1 : index
    %58 = vector.load %arg8[%c0_37, %c1_38] : memref<128x2xf32, #tpu.memory_space<vmem>>, vector<64x1xf32>
    tpu.vector_store %arg8[%c0_37, %c1_38], %57 {strides = array<i32>} : memref<128x2xf32, #tpu.memory_space<vmem>>, vector<64x1xf32>,
    %c0_i32_39 = arith.constant 0 : i32
    %c128_i32_40 = arith.constant 128 : i32
    %59 = arith.addi %c0_i32_39, %c128_i32_40 : i32
    %c1_i32_41 = arith.constant 1 : i32
    scf.for %arg11 = %c0_i32_39 to %59 step %c1_i32_41  : i32 {
      %c1_i32_65 = arith.constant 1 : i32
      %c0_i32_66 = arith.constant 0 : i32
      %c0_i32_67 = arith.constant 0 : i32
      %110 = tpu.memref_slice %arg2[%c0_i32_66, %c0_i32_67] : memref<32x128xf32, #tpu.memory_space<any>> -> memref<1x128xf32, #tpu.memory_space<any>>
      %c0_i32_68 = arith.constant 0 : i32
      %c0_i32_69 = arith.constant 0 : i32
      %111 = tpu.memref_slice %arg9[%c0_i32_68, %c0_i32_69] : memref<256x128xf32, #tpu.memory_space<vmem>> -> memref<1x128xf32, #tpu.memory_space<vmem>>
      %112 = tpu.memref_slice %arg10[%c1_i32_65] : memref<2x!tpu.dma_semaphore, #tpu.memory_space<semaphore_mem>> -> memref<1x!tpu.dma_semaphore, #tpu.memory_space<semaphore_mem>>
      %113 = tpu.memref_squeeze %112 : memref<1x!tpu.dma_semaphore, #tpu.memory_space<semaphore_mem>> -> memref<!tpu.dma_semaphore, #tpu.memory_space<semaphore_mem>>
      tpu.wait_dma2 semaphore(%113 : memref<!tpu.dma_semaphore, #tpu.memory_space<semaphore_mem>>) src(%110 : memref<1x128xf32, #tpu.memory_space<any>>) dst(%111 : memref<1x128xf32, #tpu.memory_space<vmem>>)
    }
    %c64 = arith.constant 64 : index
    %c0_42 = arith.constant 0 : index
    %60 = vector.load %arg9[%c64, %c0_42] : memref<256x128xf32, #tpu.memory_space<vmem>>, vector<64x128xf32>
    %c192 = arith.constant 192 : index
    %c0_43 = arith.constant 0 : index
    %61 = vector.load %arg9[%c192, %c0_43] : memref<256x128xf32, #tpu.memory_space<vmem>>, vector<64x128xf32>
    %cst_44 = arith.constant dense<0.000000e+00> : vector<64x32xf32>
    %62 = tpu.matmul %60, %1, %cst_44 {dimension_numbers = #tpu.dot_dimension_numbers<[1], [0], [0], [1], [0, 0, 1, 1], [], []>} : vector<64x128xf32>, vector<128x32xf32>, vector<64x32xf32> -> vector<64x32xf32>
    %cst_45 = arith.constant dense<0.000000e+00> : vector<64x32xf32>
    %63 = tpu.matmul %61, %2, %cst_45 {dimension_numbers = #tpu.dot_dimension_numbers<[1], [0], [0], [1], [0, 0, 1, 1], [], []>} : vector<64x128xf32>, vector<128x32xf32>, vector<64x32xf32> -> vector<64x32xf32>
    %64 = arith.addf %62, %63 : vector<64x32xf32>
    %65 = vector.broadcast %3 : vector<1x32xf32> to vector<64x32xf32>
    %66 = arith.addf %64, %65 : vector<64x32xf32>
    %67 = math.tanh %66 : vector<64x32xf32>
    %cst_46 = arith.constant dense<0.000000e+00> : vector<64xf32>
    %68 = vector.multi_reduction <add>, %67, %cst_46 [1] : vector<64x32xf32> to vector<64xf32>
    %69 = vector.shape_cast %68 : vector<64xf32> to vector<64x1xf32>
    %70 = arith.mulf %67, %67 : vector<64x32xf32>
    %cst_47 = arith.constant dense<0.000000e+00> : vector<64xf32>
    %71 = vector.multi_reduction <add>, %70, %cst_47 [1] : vector<64x32xf32> to vector<64xf32>
    %72 = vector.shape_cast %71 : vector<64xf32> to vector<64x1xf32>
    %73 = vector.broadcast %4 : vector<1x32xf32> to vector<64x32xf32>
    %74 = arith.mulf %67, %73 : vector<64x32xf32>
    %cst_48 = arith.constant dense<0.000000e+00> : vector<64xf32>
    %75 = vector.multi_reduction <add>, %74, %cst_48 [1] : vector<64x32xf32> to vector<64xf32>
    %76 = vector.shape_cast %75 : vector<64xf32> to vector<64x1xf32>
    %cst_49 = arith.constant 3.125000e-02 : f32
    %77 = vector.broadcast %cst_49 : f32 to vector<64x1xf32>
    %78 = arith.mulf %69, %77 : vector<64x1xf32>
    %cst_50 = arith.constant 3.125000e-02 : f32
    %79 = vector.broadcast %cst_50 : f32 to vector<64x1xf32>
    %80 = arith.mulf %72, %79 : vector<64x1xf32>
    %81 = arith.mulf %78, %78 : vector<64x1xf32>
    %82 = arith.subf %80, %81 : vector<64x1xf32>
    %cst_51 = arith.constant 0.000000e+00 : f32
    %83 = vector.broadcast %cst_51 : f32 to vector<64x1xf32>
    %84 = arith.maximumf %82, %83 : vector<64x1xf32>
    %cst_52 = arith.constant 9.99999974E-6 : f32
    %85 = vector.broadcast %cst_52 : f32 to vector<64x1xf32>
    %86 = arith.addf %84, %85 : vector<64x1xf32>
    %87 = math.rsqrt %86 : vector<64x1xf32>
    %88 = arith.mulf %87, %76 : vector<64x1xf32>
    %89 = vector.broadcast %5 : vector<1x1xf32> to vector<64x1xf32>
    %90 = arith.addf %88, %89 : vector<64x1xf32>
    %c64_53 = arith.constant 64 : index
    %c0_54 = arith.constant 0 : index
    %91 = vector.load %arg7[%c64_53, %c0_54] : memref<128x2xf32, #tpu.memory_space<vmem>>, vector<64x1xf32>
    %c64_55 = arith.constant 64 : index
    %c1_56 = arith.constant 1 : index
    %92 = vector.load %arg7[%c64_55, %c1_56] : memref<128x2xf32, #tpu.memory_space<vmem>>, vector<64x1xf32>
    %93 = arith.subf %90, %91 : vector<64x1xf32>
    %94 = math.absf %93 : vector<64x1xf32>
    %cst_57 = arith.constant 1.000000e+00 : f32
    %95 = vector.broadcast %cst_57 : f32 to vector<64x1xf32>
    %96 = arith.cmpf olt, %94, %95 : vector<64x1xf32>
    %cst_58 = arith.constant 5.000000e-01 : f32
    %97 = vector.broadcast %cst_58 : f32 to vector<64x1xf32>
    %98 = arith.mulf %97, %93 : vector<64x1xf32>
    %99 = arith.mulf %98, %93 : vector<64x1xf32>
    %cst_59 = arith.constant 5.000000e-01 : f32
    %100 = vector.broadcast %cst_59 : f32 to vector<64x1xf32>
    %101 = arith.subf %94, %100 : vector<64x1xf32>
    %102 = arith.select %96, %99, %101 : vector<64x1xi1>, vector<64x1xf32>
    %cst_60 = arith.constant 1.000000e+01 : f32
    %103 = vector.broadcast %cst_60 : f32 to vector<64x1xf32>
    %104 = arith.mulf %103, %94 : vector<64x1xf32>
    %105 = math.tanh %104 : vector<64x1xf32>
    %c64_61 = arith.constant 64 : index
    %c0_62 = arith.constant 0 : index
    %106 = vector.load %arg8[%c64_61, %c0_62] : memref<128x2xf32, #tpu.memory_space<vmem>>, vector<64x1xf32>
    tpu.vector_store %arg8[%c64_61, %c0_62], %90 {strides = array<i32>} : memref<128x2xf32, #tpu.memory_space<vmem>>, vector<64x1xf32>,
    %107 = arith.mulf %102, %105 : vector<64x1xf32>
    %108 = arith.mulf %107, %92 : vector<64x1xf32>
    %c64_63 = arith.constant 64 : index
    %c1_64 = arith.constant 1 : index
    %109 = vector.load %arg8[%c64_63, %c1_64] : memref<128x2xf32, #tpu.memory_space<vmem>>, vector<64x1xf32>
    tpu.vector_store %arg8[%c64_63, %c1_64], %108 {strides = array<i32>} : memref<128x2xf32, #tpu.memory_space<vmem>>, vector<64x1xf32>,
    return
  }
  func.func @transform_1(%arg0: i32, %arg1: memref<2x128xi32, #tpu.memory_space<smem>>) -> (i32, i32) {
    %c0_i32 = arith.constant 0 : i32
    %c0_i32_0 = arith.constant 0 : i32
    %c0_i32_1 = arith.constant 0 : i32
    return %c0_i32, %c0_i32_0 : i32, i32
  }
  func.func @transform_2(%arg0: i32, %arg1: memref<2x128xi32, #tpu.memory_space<smem>>) -> (i32, i32) {
    %c0_i32 = arith.constant 0 : i32
    %c0_i32_0 = arith.constant 0 : i32
    %c0_i32_1 = arith.constant 0 : i32
    return %c0_i32, %c0_i32_0 : i32, i32
  }
  func.func @transform_3(%arg0: i32, %arg1: memref<2x128xi32, #tpu.memory_space<smem>>) -> (i32, i32) {
    %c0_i32 = arith.constant 0 : i32
    %c0_i32_0 = arith.constant 0 : i32
    %c0_i32_1 = arith.constant 0 : i32
    return %c0_i32, %c0_i32_0 : i32, i32
  }
  func.func @transform_4(%arg0: i32, %arg1: memref<2x128xi32, #tpu.memory_space<smem>>) -> (i32, i32) {
    %c0_i32 = arith.constant 0 : i32
    %c0_i32_0 = arith.constant 0 : i32
    %c0_i32_1 = arith.constant 0 : i32
    return %c0_i32, %c0_i32_0 : i32, i32
  }
  func.func @transform_5(%arg0: i32, %arg1: memref<2x128xi32, #tpu.memory_space<smem>>) -> (i32, i32) {
    %c0_i32 = arith.constant 0 : i32
    %c0_i32_0 = arith.constant 0 : i32
    return %arg0, %c0_i32 : i32, i32
  }
  func.func @transform_6(%arg0: i32, %arg1: memref<2x128xi32, #tpu.memory_space<smem>>) -> (i32, i32) {
    %c0_i32 = arith.constant 0 : i32
    %c0_i32_0 = arith.constant 0 : i32
    return %arg0, %c0_i32 : i32, i32
  }
}

</mosaic_0001>

<bundles_post_ra>
// kernel: tpu_custom_call.1
= control target key start
LH: loop header
LB: loop body
LE: loop exit
PB: predicated region body
PF: predicated region fallthrough
CT: control target
= control target key end

     0   :  { %s2860_s0 = inlined_call_operand.vmem [shape: s32[2,128], index: 0, kind: input, shape index: {}]   ;;  %s2861_s1 = inlined_call_operand.vmem [shape: f32[32,128], index: 1, kind: input, shape index: {}]   ;;  %s2862_s2 = inlined_call_operand.vmem [shape: f32[256,32], index: 2, kind: input, shape index: {}]   ;;  %s2863_s3 = inlined_call_operand.vmem [shape: f32[1,32], index: 3, kind: input, shape index: {}]   ;;  %s2864_s4 = inlined_call_operand.vmem [shape: f32[1,32], index: 4, kind: input, shape index: {}]   ;;  %s2865_s6 = inlined_call_operand.vmem [shape: f32[128,2], index: 6, kind: input, shape index: {}]   ;;  %s2866_s7 = inlined_call_operand.vmem [shape: f32[128,2], index: 7, kind: output, shape index: {}]   ;;  %s2867_s5 = inlined_call_operand.<no memory space> [shape: f32[1,1], index: 5, kind: input, shape index: {}]  }
   0x1   :  { %s12_s26 = sshll.u32 %s2860_s0, 4  ;;  %v16_v0 = vstv %s2867_s5  ;;  %s13_s26 = int_to_ptr.vmem [resolvable:$true] %s12_s26 }
   0x2   :  { %17 = vst [vmem:[#allocation6] sm:$0x1] %v16_v0  ;;  %s2017_s29 = scalar_lea.vmem %s13_s26, 32  ;;  %p2022_p1 = scmp.lt.s32.totalorder %s13_s26, %s13_s26 }
   0x3   :  { %p2018_p0 = scmp.ne.s32.totalorder %s13_s26, %s2017_s29  ;;  %p2023_p2 = scmp.lt.s32.totalorder %s2017_s29, %s2017_s29 }
   0x5   :  { %p2024_p3 = por %p2023_p2, %p2022_p1 }
   0x7   :  { %p2025_p4 = pnand %p2024_p3, %p2018_p0 }
   0x9   :  { %2028 = shalt.err (!%p2025_p4)  }
   0xa   :  { %s2067_s30 = smov [#allocation5]  }
   0xb   :  { %15 = dma.vmem_to_smem %s13_s26, 32, %s2067_s30, [#allocation4] }
   0xc   :  { %2045 = dma.done.wait [#allocation4], 32 }
   0xd   :  { %2046 = vsyncadd [#allocation4], 4294967264 }
   0xe   :  { %19 = sfence }
   0xf   :  { %v2119_v1 = vld [vmem:[%s2862_s2] sm:$0xff]  ;;  %v2124_v2 = vld [vmem:[%s2862_s2 + $0x8] sm:$0xff]  ;;  %v2129_v3 = vld [vmem:[%s2862_s2 + $0x10] sm:$0xff]  ;;  %s2051_s24 = smov 0  }
  0x10   :  { %2876 = vst [vmem:[#allocation14_spill] sm:$0xff] %v2119_v1  ;;  %v2134_v4 = vld [vmem:[%s2862_s2 + $0x18] sm:$0xff]  ;;  %v2139_v5 = vld [vmem:[%s2862_s2 + $0x20] sm:$0xff]  ;;  %v2144_v6 = vld [vmem:[%s2862_s2 + $0x28] sm:$0xff] }
  0x11   :  { %v2149_v7 = vld [vmem:[%s2862_s2 + $0x30] sm:$0xff]  ;;  %v2154_v8 = vld [vmem:[%s2862_s2 + $0x38] sm:$0xff]  ;;  %v2159_v9 = vld [vmem:[%s2862_s2 + $0x40] sm:$0xff] }
  0x12   :  { %v2164_v10 = vld [vmem:[%s2862_s2 + $0x48] sm:$0xff]  ;;  %v2169_v11 = vld [vmem:[%s2862_s2 + $0x50] sm:$0xff]  ;;  %v2174_v12 = vld [vmem:[%s2862_s2 + $0x58] sm:$0xff] }
  0x13   :  { %v2179_v13 = vld [vmem:[%s2862_s2 + $0x60] sm:$0xff]  ;;  %v2184_v14 = vld [vmem:[%s2862_s2 + $0x68] sm:$0xff]  ;;  %v2189_v15 = vld [vmem:[%s2862_s2 + $0x70] sm:$0xff] }
  0x14   :  { %v2194_v16 = vld [vmem:[%s2862_s2 + $0x78] sm:$0xff]  ;;  %v2199_v17 = vld [vmem:[%s2862_s2 + $0x80] sm:$0xff]  ;;  %v2204_v18 = vld [vmem:[%s2862_s2 + $0x88] sm:$0xff] }
  0x15   :  { %2877 = vst [vmem:[#allocation15_spill] sm:$0xff] %v2199_v17  ;;  %v2209_v19 = vld [vmem:[%s2862_s2 + $0x90] sm:$0xff]  ;;  %v2214_v20 = vld [vmem:[%s2862_s2 + $0x98] sm:$0xff]  ;;  %v2219_v21 = vld [vmem:[%s2862_s2 + $0xa0] sm:$0xff] }
  0x16   :  { %v2224_v22 = vld [vmem:[%s2862_s2 + $0xa8] sm:$0xff]  ;;  %v2229_v23 = vld [vmem:[%s2862_s2 + $0xb0] sm:$0xff]  ;;  %v2234_v24 = vld [vmem:[%s2862_s2 + $0xb8] sm:$0xff] }
  0x17   :  { %v2239_v25 = vld [vmem:[%s2862_s2 + $0xc0] sm:$0xff]  ;;  %v2244_v26 = vld [vmem:[%s2862_s2 + $0xc8] sm:$0xff]  ;;  %v2249_v27 = vld [vmem:[%s2862_s2 + $0xd0] sm:$0xff] }
  0x18   :  { %v2254_v28 = vld [vmem:[%s2862_s2 + $0xd8] sm:$0xff]  ;;  %v2259_v29 = vld [vmem:[%s2862_s2 + $0xe0] sm:$0xff]  ;;  %v2264_v30 = vld [vmem:[%s2862_s2 + $0xe8] sm:$0xff] }
  0x19   :  { %v2269_v31 = vld [vmem:[%s2862_s2 + $0xf0] sm:$0xff]  ;;  %v2274_v32 = vld [vmem:[%s2862_s2 + $0xf8] sm:$0xff]  ;;  %v2279_v33 = vld [vmem:[%s2863_s3] ss:$0 sm:$0xff] }
  0x1a   :  { %2878 = vst [vmem:[#allocation16_spill] sm:$0xff] %v2279_v33  ;;  %v2284_v34 = vld [vmem:[%s2864_s4] ss:$0 sm:$0xff] }
  0x1b   :  { %2879 = vst [vmem:[#allocation17_spill] sm:$0xff] %v2284_v34  ;;  %v2286_v35 = vld [vmem:[#allocation6] ss:$0 sm:$0xff] }
  0x1c LB: > { %s73_s25 = sld [smem:[#allocation5 + %s2053_s24]]  ;;  %s74_s26 = sshra.s32 %s2053_s24, 7  ;;  %s2053_s24 = sphi %s2051_s24, %s71_s24  }
  0x1d   : > { %s1610_s2 = sshll.u32 %s74_s26, 7  ;;  %s79_s27 = sand.u32 127, %s2053_s24 }
  0x1e   : > { %s1611_s28 = sadd.s32 128, %s1610_s2  ;;  %s83_s4 = scalar_lea.vmem [#allocation2], %s2053_s24 }
  0x1f   : > { %s80_s29 = sadd.s32 %s1611_s28, %s79_s27 }
  0x20   : > { %s81_s30 = sld [smem:[#allocation5 + %s80_s29]] }
  0x22   : > { %s82_s0 = scalar_lea.vmem %s2861_s1, %s73_s25 }
  0x23   : > { %v102_v36 = vld [vmem:[%s82_s0] sm:$0x1] }
  0x24   : > { %103 = vst [vmem:[%s83_s4] sm:$0x1] %v102_v36 }
  0x25   : > { %129 = vsyncadd [#allocation3], 16 }
  0x26   : > { %s131_s10 = scalar_lea.vmem %s2861_s1, %s81_s30 }
  0x27   : > { %v151_v37 = vld [vmem:[%s131_s10] sm:$0x1] }
  0x28   : > { %1583 = vst [vmem:[%s83_s4 + $0x80] sm:$0x1] %v151_v37 }
  0x29   : > { %178 = vsyncadd [#allocation3], 16  ;;  %s71_s24 = sadd.s32 1, %s2053_s24  }
  0x2a   : > { %p68_p5 = scmp.ge.s32.totalorder %s71_s24, 64  }
  0x2b   :  { %s2055_s11 = smov (%p68_p5), 0  }
  0x2c   :  { %70 = sbr.rel (!%p68_p5) target bundleno = 28 (0x1c), region = 239 }
  0x31 LB: > { %s185_s12 = sadd.s32 64, %s2057_s11  ;;  %s1518_s23 = scalar_lea.vmem [#allocation2], %s2057_s11  ;;  %s2057_s11 = sphi %s2055_s11, %s184_s11  }
  0x32   : > { %s187_s13 = sld [smem:[#allocation5 + %s185_s12]]  ;;  %s188_s14 = sshra.s32 %s185_s12, 7 }
  0x33   : > { %s1612_s15 = sshll.u32 %s188_s14, 7  ;;  %s193_s16 = sand.u32 127, %s185_s12 }
  0x34   : > { %s1613_s17 = sadd.s32 128, %s1612_s15 }
  0x35   : > { %s194_s18 = sadd.s32 %s1613_s17, %s193_s16 }
  0x36   : > { %s195_s19 = sld [smem:[#allocation5 + %s194_s18]] }
  0x38   : > { %s196_s22 = scalar_lea.vmem %s2861_s1, %s187_s13 }
  0x39   : > { %v217_v38 = vld [vmem:[%s196_s22] sm:$0x1] }
  0x3a   : > { %1586 = vst [vmem:[%s1518_s23 + $0x40] sm:$0x1] %v217_v38 }
  0x3b   : > { %244 = vsyncadd [#allocation3 + $0x1], 16 }
  0x3c   : > { %s246_s26 = scalar_lea.vmem %s2861_s1, %s195_s19 }
  0x3d   : > { %v266_v39 = vld [vmem:[%s246_s26] sm:$0x1] }
  0x3e   : > { %1588 = vst [vmem:[%s1518_s23 + $0xc0] sm:$0x1] %v266_v39 }
  0x3f   : > { %293 = vsyncadd [#allocation3 + $0x1], 16  ;;  %s184_s11 = sadd.s32 1, %s2057_s11  }
  0x40   : > { %p181_p6 = scmp.ge.s32.totalorder %s184_s11, 64  }
  0x41   :  { %s2059_s2 = smov (%p181_p6), 0  }
  0x42   :  { %183 = sbr.rel (!%p181_p6) target bundleno = 49 (0x31), region = 250 }
  0x47 LB: > { %2047 = dma.done.wait [#allocation3], 16  ;;  %s2061_s2 = sphi %s2059_s2, %s299_s2  }
  0x48   : > { %2048 = vsyncadd [#allocation3], 4294967280  ;;  %s299_s2 = sadd.s32 1, %s2061_s2  }
  0x49   : > { %p296_p7 = scmp.ge.s32.totalorder %s299_s2, 128  }
  0x4a   :  { %1710 = vmatprep.subr.mxu0 (%p296_p7), %v2274_v32  ;;  %1754 = vmatprep.subr.mxu1 (%p296_p7), %v2194_v16  ;;  %v311_v40 = vld [vmem:[#allocation2 + $0x80] sm:$0xff] (%p296_p7)  ;;  %v312_v42 = vld [vmem:[#allocation2 + $0x88] sm:$0xff] (%p296_p7)  ;;  %v313_v44 = vld [vmem:[#allocation2 + $0x90] sm:$0xff] (%p296_p7)  ;;  %vm551_vm0 = vcmask (%p296_p7), 261120   ;;  %s2068_s28 = smov (%p296_p7), 127   ;;  %vm804_vm1 = vcmask (%p296_p7), 7168  }
  0x4b   :  { %298 = sbr.rel (!%p296_p7) target bundleno = 71 (0x47), region = 261  ;;  %1711 = vmatpush3.msra.mxu0 (%p296_p7), %v2274_v32  ;;  %1755 = vmatpush3.msra.mxu1 (%p296_p7), %v2194_v16  ;;  %v303_v41 = vld [vmem:[#allocation2] sm:$0xff] (%p296_p7)  ;;  %v304_v43 = vld [vmem:[#allocation2 + $0x8] sm:$0xff] (%p296_p7)  ;;  %v305_v45 = vld [vmem:[#allocation2 + $0x10] sm:$0xff] (%p296_p7)  ;;  %s2069_s3 = smov (%p296_p7), 1   ;;  %vm893_vm10 = vcmask (%p296_p7), 15368  }
  0x4c   :  { %1712 = vmatprep.subr.mxu0 (%p296_p7), %v2269_v31  ;;  %1756 = vmatprep.subr.mxu1 (%p296_p7), %v2189_v15  ;;  %v314_v46 = vld [vmem:[#allocation2 + $0x98] sm:$0xff] (%p296_p7)  ;;  %v315_v48 = vld [vmem:[#allocation2 + $0xa0] sm:$0xff] (%p296_p7)  ;;  %v316_v50 = vld [vmem:[#allocation2 + $0xa8] sm:$0xff] (%p296_p7)  ;;  %s2063_s21 = smov (%p296_p7), 0  }
  0x4d   :  { %1713 = vmatpush3.msra.mxu0 (%p296_p7), %v2269_v31  ;;  %1757 = vmatpush3.msra.mxu1 (%p296_p7), %v2189_v15  ;;  %v306_v47 = vld [vmem:[#allocation2 + $0x18] sm:$0xff] (%p296_p7)  ;;  %v307_v49 = vld [vmem:[#allocation2 + $0x20] sm:$0xff] (%p296_p7)  ;;  %v308_v51 = vld [vmem:[#allocation2 + $0x28] sm:$0xff] (%p296_p7) }
  0x4e   :  { %1714 = vmatprep.subr.mxu0 (%p296_p7), %v2264_v30  ;;  %1758 = vmatprep.subr.mxu1 (%p296_p7), %v2184_v14  ;;  %v317_v52 = vld [vmem:[#allocation2 + $0xb0] sm:$0xff] (%p296_p7)  ;;  %v318_v54 = vld [vmem:[#allocation2 + $0xb8] sm:$0xff] (%p296_p7) }
  0x4f   :  { %1715 = vmatpush3.msra.mxu0 (%p296_p7), %v2264_v30  ;;  %1759 = vmatpush3.msra.mxu1 (%p296_p7), %v2184_v14  ;;  %v309_v53 = vld [vmem:[#allocation2 + $0x30] sm:$0xff] (%p296_p7)  ;;  %v310_v55 = vld [vmem:[#allocation2 + $0x38] sm:$0xff] (%p296_p7) }
  0x50   :  { %1716 = vmatprep.subr.mxu0 %v2259_v29  ;;  %1760 = vmatprep.subr.mxu1 %v2179_v13 }
  0x51   :  { %1717 = vmatpush3.msra.mxu0 %v2259_v29  ;;  %1761 = vmatpush3.msra.mxu1 %v2179_v13 }
  0x52   :  { %1718 = vmatprep.subr.mxu0 %v2254_v28  ;;  %1762 = vmatprep.subr.mxu1 %v2174_v12 }
  0x53   :  { %1719 = vmatpush3.msra.mxu0 %v2254_v28  ;;  %1763 = vmatpush3.msra.mxu1 %v2174_v12 }
  0x54   :  { %1720 = vmatprep.subr.mxu0 %v2249_v27  ;;  %1764 = vmatprep.subr.mxu1 %v2169_v11 }
  0x55   :  { %1721 = vmatpush3.msra.mxu0 %v2249_v27  ;;  %1765 = vmatpush3.msra.mxu1 %v2169_v11 }
  0x56   :  { %1722 = vmatprep.subr.mxu0 %v2244_v26  ;;  %1766 = vmatprep.subr.mxu1 %v2164_v10 }
  0x57   :  { %1723 = vmatpush3.msra.mxu0 %v2244_v26  ;;  %1767 = vmatpush3.msra.mxu1 %v2164_v10 }
  0x58   :  { %1724 = vmatprep.subr.mxu0 %v2239_v25  ;;  %1768 = vmatprep.subr.mxu1 %v2159_v9 }
  0x59   :  { %1725 = vmatpush3.msra.mxu0 %v2239_v25  ;;  %1769 = vmatpush3.msra.mxu1 %v2159_v9 }
  0x5a   :  { %1726 = vmatprep.subr.mxu0 %v2234_v24  ;;  %1770 = vmatprep.subr.mxu1 %v2154_v8 }
  0x5b   :  { %1727 = vmatpush3.msra.mxu0 %v2234_v24  ;;  %1771 = vmatpush3.msra.mxu1 %v2154_v8 }
  0x5c   :  { %1728 = vmatprep.subr.mxu0 %v2229_v23  ;;  %1772 = vmatprep.subr.mxu1 %v2149_v7 }
  0x5d   :  { %1729 = vmatpush3.msra.mxu0 %v2229_v23  ;;  %1773 = vmatpush3.msra.mxu1 %v2149_v7 }
  0x5e   :  { %1730 = vmatprep.subr.mxu0 %v2224_v22  ;;  %1774 = vmatprep.subr.mxu1 %v2144_v6 }
  0x5f   :  { %1731 = vmatpush3.msra.mxu0 %v2224_v22  ;;  %1775 = vmatpush3.msra.mxu1 %v2144_v6 }
  0x60   :  { %1732 = vmatprep.subr.mxu0 %v2219_v21  ;;  %1776 = vmatprep.subr.mxu1 %v2139_v5 }
  0x61   :  { %1733 = vmatpush3.msra.mxu0 %v2219_v21  ;;  %1777 = vmatpush3.msra.mxu1 %v2139_v5 }
  0x62   :  { %1734 = vmatprep.subr.mxu0 %v2214_v20  ;;  %1778 = vmatprep.subr.mxu1 %v2134_v4 }
  0x63   :  { %1735 = vmatpush3.msra.mxu0 %v2214_v20  ;;  %1779 = vmatpush3.msra.mxu1 %v2134_v4 }
  0x64   :  { %1736 = vmatprep.subr.mxu0 %v2209_v19  ;;  %1780 = vmatprep.subr.mxu1 %v2129_v3 }
  0x65   :  { %1737 = vmatpush3.msra.mxu0 %v2209_v19  ;;  %1781 = vmatpush3.msra.mxu1 %v2129_v3 }
  0x66   :  { %1738 = vmatprep.subr.mxu0 %v2204_v18  ;;  %1782 = vmatprep.subr.mxu1 %v2124_v2 }
  0x67   :  { %1739 = vmatpush3.msra.mxu0 %v2204_v18  ;;  %1783 = vmatpush3.msra.mxu1 %v2124_v2 }
  0x68   :  { %1740 = vmatprep.subr.mxu0 %v2199_v17  ;;  %1784 = vmatprep.subr.mxu1 %v2119_v1 }
  0x69   :  { %1741 = vmatpush3.msra.mxu0 %v2199_v17  ;;  %1742 = vmatprep.mubr.f32.mxu0 %v311_v40 }
  0x6a   :  { %1785 = vmatpush3.msra.mxu1 %v2119_v1  ;;  %1786 = vmatprep.mubr.f32.mxu1 %v303_v41 }
  0x6b   :  { %1743 = vmatmul.mubr.f32.vlgmr.msra.gmra.mxu0 %v312_v42  ;;  %1787 = vmatmul.mubr.f32.vlgmr.msra.gmra.mxu1 %v304_v43 }
  0x6c   :  { %1745 = vmatprep.mubr.f32.mxu0 %v313_v44  ;;  %1789 = vmatprep.mubr.f32.mxu1 %v305_v45 }
  0x6f   :  { %1746 = vmatmul.mubr.f32.gmra.mxu0 %v314_v46  ;;  %1790 = vmatmul.mubr.f32.gmra.mxu1 %v306_v47 }
  0x70   :  { %1748 = vmatprep.mubr.f32.mxu0 %v315_v48  ;;  %1792 = vmatprep.mubr.f32.mxu1 %v307_v49 }
  0x73   :  { %1749 = vmatmul.mubr.f32.gmra.mxu0 %v316_v50  ;;  %1793 = vmatmul.mubr.f32.gmra.mxu1 %v308_v51 }
  0x74   :  { %1751 = vmatprep.mubr.f32.mxu0 %v317_v52  ;;  %1795 = vmatprep.mubr.f32.mxu1 %v309_v53 }
  0x77   :  { %1752 = vmatmul.mubr.f32.gmra.mxu0 %v318_v54  ;;  %1796 = vmatmul.mubr.f32.gmra.mxu1 %v310_v55 }
 0x12b   :  { %v1744_v56 = vpop.f32.mrf.mxu0  ;;  %v1788_v57 = vpop.f32.mrf.mxu1 }
 0x12c   :  { %v496_v58 = vadd.f32 %v1788_v57, %v1744_v56 }
 0x12d   :  { %v385_v59 = vpop.f32.mrf.mxu0  ;;  %v490_v60 = vpop.f32.mrf.mxu1 }
 0x12e   :  { %v536_v61 = vadd.f32 %v2279_v33, %v496_v58  ;;  %v491_v62 = vadd.f32 %v490_v60, %v385_v59 }
 0x12f   :  { %v1747_v63 = vpop.f32.mrf.mxu0  ;;  %v1791_v0 = vpop.f32.mrf.mxu1 }
 0x130   :  { %1921 = vtanh.f32 %v536_v61  ;;  %v535_v36 = vadd.f32 %v2279_v33, %v491_v62  ;;  %v506_v37 = vadd.f32 %v1791_v0, %v1747_v63 }
 0x131   :  { %v395_v38 = vpop.f32.mrf.mxu0  ;;  %v500_v39 = vpop.f32.mrf.mxu1 }
 0x132   :  { %1923 = vtanh.f32 %v535_v36  ;;  %v538_v40 = vadd.f32 %v2279_v33, %v506_v37  ;;  %v501_v41 = vadd.f32 %v500_v39, %v395_v38 }
 0x133   :  { %v1750_v42 = vpop.f32.mrf.mxu0  ;;  %v1794_v43 = vpop.f32.mrf.mxu1 }
 0x134   :  { %1925 = vtanh.f32 %v538_v40  ;;  %v537_v44 = vadd.f32 %v2279_v33, %v501_v41  ;;  %v516_v50 = vadd.f32 %v1794_v43, %v1750_v42 }
 0x135   :  { %v405_v45 = vpop.f32.mrf.mxu0  ;;  %v510_v46 = vpop.f32.mrf.mxu1 }
 0x136   :  { %1927 = vtanh.f32 %v537_v44  ;;  %v511_v47 = vadd.f32 %v510_v46, %v405_v45  ;;  %v540_v54 = vadd.f32 %v2279_v33, %v516_v50 }
 0x137   :  { %v1753_v48 = vpop.f32.mrf.mxu0  ;;  %v1797_v49 = vpop.f32.mrf.mxu1 }
 0x138   :  { %v539_v51 = vadd.f32 %v2279_v33, %v511_v47  ;;  %v526_v61 = vadd.f32 %v1797_v49, %v1753_v48 }
 0x139   :  { %v415_v52 = vpop.f32.mrf.mxu0  ;;  %v520_v53 = vpop.f32.mrf.mxu1 }
 0x13a   :  { %1929 = vtanh.f32 %v539_v51  ;;  %v521_v55 = vadd.f32 %v520_v53, %v415_v52  ;;  %v542_v39 = vadd.f32 %v2279_v33, %v526_v61 }
 0x13b   :  { %1931 = vtanh.f32 %v540_v54 }
 0x13c   :  { %v541_v62 = vadd.f32 %v2279_v33, %v521_v55 }
 0x13d   :  { %v1922_v56 = vpop.eup %1921 }
 0x13e   :  { %v555_v57 = vsel %vm551_vm0, %v1922_v56, 0.0  ;;  %v577_v58 = vmul.f32 %v1922_v56, %v1922_v56  ;;  %1933 = vtanh.f32 %v541_v62 }
 0x13f   :  { %v1924_v59 = vpop.eup %1923  ;;  %556 = vadd.xlane.f32.xlu0 %v555_v57  ;;  %1935 = vtanh.f32 %v542_v39 }
 0x140   :  { %v587_v60 = vsel %vm551_vm0, %v577_v58, 0.0  ;;  %v552_v0 = vsel %vm551_vm0, %v1924_v59, 0.0  ;;  %v576_v37 = vmul.f32 %v1924_v59, %v1924_v59 }
 0x141   :  { %v1926_v63 = vpop.eup %1925  ;;  %588 = vadd.xlane.f32.xlu1 %v587_v60 }
 0x142   :  { %v561_v36 = vsel %vm551_vm0, %v1926_v63, 0.0  ;;  %v584_v40 = vsel %vm551_vm0, %v576_v37, 0.0  ;;  %v579_v43 = vmul.f32 %v1926_v63, %v1926_v63  ;;  %v615_v37 = vmul.f32 %v1922_v56, %v2284_v34 }
 0x143   :  { %v1928_v38 = vpop.eup %1927  ;;  %553 = vadd.xlane.f32.xlu0 %v552_v0  ;;  %v614_v0 = vmul.f32 %v1924_v59, %v2284_v34 }
 0x144   :  { %v578_v41 = vmul.f32 %v1928_v38, %v1928_v38  ;;  %v558_v42 = vsel %vm551_vm0, %v1928_v38, 0.0  ;;  %v593_v46 = vsel %vm551_vm0, %v579_v43, 0.0 }
 0x145   :  { %562 = vadd.xlane.f32.xlu1 %v561_v36  ;;  %v622_v39 = vsel %vm551_vm0, %v614_v0, 0.0 }
 0x146   :  { %v590_v45 = vsel %vm551_vm0, %v578_v41, 0.0  ;;  %v625_v41 = vsel %vm551_vm0, %v615_v37, 0.0 }
 0x147   :  { %585 = vadd.xlane.f32.xlu0 %v584_v40  ;;  %v1930_v44 = vpop.eup %1929  ;;  %v616_v40 = vmul.f32 %v1928_v38, %v2284_v34 }
 0x148   :  { %v564_v47 = vsel %vm551_vm0, %v1930_v44, 0.0  ;;  %v1932_v48 = vpop.eup %1931  ;;  %v580_v49 = vmul.f32 %v1930_v44, %v1930_v44  ;;  %v618_v59 = vmul.f32 %v1930_v44, %v2284_v34 }
 0x149   :  { %559 = vadd.xlane.f32.xlu1 %v558_v42  ;;  %v567_v50 = vsel %vm551_vm0, %v1932_v48, 0.0  ;;  %v581_v51 = vmul.f32 %v1932_v48, %v1932_v48  ;;  %v617_v42 = vmul.f32 %v1926_v63, %v2284_v34  ;;  %v628_v43 = vsel %vm551_vm0, %v616_v40, 0.0 }
 0x14a   :  { %v596_v53 = vsel %vm551_vm0, %v580_v49, 0.0  ;;  %v619_v56 = vmul.f32 %v1932_v48, %v2284_v34  ;;  %v2407_v48 = vld [vmem:[%s2865_s6 + $0x8] sm:$0xff] }
 0x14b   :  { %591 = vadd.xlane.f32.xlu0 %v590_v45  ;;  %v1934_v52 = vpop.eup %1933  ;;  %v599_v54 = vsel %vm551_vm0, %v581_v51, 0.0  ;;  %v631_v45 = vsel %vm551_vm0, %v617_v42, 0.0  ;;  %v2419_v51 = vld [vmem:[%s2865_s6 + $0x10] sm:$0xff] }
 0x14c   :  { %v570_v55 = vsel %vm551_vm0, %v1934_v52, 0.0  ;;  %v1936_v57 = vpop.eup %1935  ;;  %v582_v58 = vmul.f32 %v1934_v52, %v1934_v52  ;;  %v620_v38 = vmul.f32 %v1934_v52, %v2284_v34  ;;  %v2428_v52 = vld [vmem:[%s2865_s6 + $0x20] sm:$0xff] }
 0x14d   :  { %594 = vadd.xlane.f32.xlu1 %v593_v46  ;;  %v573_v60 = vsel %vm551_vm0, %v1936_v57, 0.0  ;;  %v583_v61 = vmul.f32 %v1936_v57, %v1936_v57  ;;  %v634_v46 = vsel %vm551_vm0, %v618_v59, 0.0  ;;  %v621_v63 = vmul.f32 %v1936_v57, %v2284_v34  ;;  %v2456_v57 = vld [vmem:[%s2865_s6 + $0x38] sm:$0xff] }
 0x14e   :  { %v602_v62 = vsel %vm551_vm0, %v582_v58, 0.0  ;;  %v640_v49 = vsel %vm551_vm0, %v620_v38, 0.0 }
 0x14f   :  { %565 = vadd.xlane.f32.xlu0 %v564_v47  ;;  %v605_v36 = vsel %vm551_vm0, %v583_v61, 0.0  ;;  %v637_v47 = vsel %vm551_vm0, %v619_v56, 0.0  ;;  %v643_v44 = vsel %vm551_vm0, %v621_v63, 0.0 }
 0x151   :  { %568 = vadd.xlane.f32.xlu1 %v567_v50  ;;  %v2414_v50 = vld [vmem:[%s2865_s6] sm:$0xff] }
 0x153   :  { %597 = vadd.xlane.f32.xlu0 %v596_v53  ;;  %v2433_v53 = vld [vmem:[%s2865_s6 + $0x18] sm:$0xff] }
 0x155   :  { %600 = vadd.xlane.f32.xlu1 %v599_v54  ;;  %v2442_v54 = vld [vmem:[%s2865_s6 + $0x30] sm:$0xff] }
 0x157   :  { %571 = vadd.xlane.f32.xlu0 %v570_v55  ;;  %v2447_v55 = vld [vmem:[%s2865_s6 + $0x28] sm:$0xff] }
 0x159   :  { %574 = vadd.xlane.f32.xlu1 %v573_v60 }
 0x15b   :  { %603 = vadd.xlane.f32.xlu0 %v602_v62 }
 0x15d   :  { %606 = vadd.xlane.f32.xlu1 %v605_v36 }
 0x15f   :  { %623 = vadd.xlane.f32.xlu0 %v622_v39 }
 0x161   :  { %626 = vadd.xlane.f32.xlu1 %v625_v41 }
 0x163   :  { %629 = vadd.xlane.f32.xlu0 %v628_v43 }
 0x165   :  { %632 = vadd.xlane.f32.xlu1 %v631_v45 }
 0x167   :  { %635 = vadd.xlane.f32.xlu0 %v634_v46 }
 0x169   :  { %638 = vadd.xlane.f32.xlu1 %v637_v47 }
 0x16b   :  { %641 = vadd.xlane.f32.xlu0 %v640_v49 }
 0x16d   :  { %644 = vadd.xlane.f32.xlu1 %v643_v44 }
 0x17e   :  { %831 = vrot.lane.b32.xlu1 %v2407_v48, %s2068_s28 }
 0x181   :  { %829 = vrot.lane.b32.xlu0 %v2414_v50, %s2068_s28 }
 0x182   :  { %833 = vrot.lane.b32.xlu1 %v2419_v51, %s2068_s28 }
 0x185   :  { %837 = vrot.lane.b32.xlu0 %v2428_v52, %s2068_s28 }
 0x186   :  { %835 = vrot.lane.b32.xlu1 %v2433_v53, %s2068_s28 }
 0x189   :  { %841 = vrot.lane.b32.xlu0 %v2442_v54, %s2068_s28 }
 0x18a   :  { %839 = vrot.lane.b32.xlu1 %v2447_v55, %s2068_s28 }
 0x18e   :  { %843 = vrot.lane.b32.xlu1 %v2456_v57, %s2068_s28 }
 0x1c8   :  { %v557_v58 = vpop.xlane.xlu0 %556 }
 0x1c9   :  { %v647_v60 = vmul.f32 0.03125, %v557_v58 }
 0x1ca   :  { %v589_v61 = vpop.xlane.xlu1 %588 }
 0x1cb   :  { %v663_v0 = vmul.f32 %v647_v60, %v647_v60  ;;  %v655_v36 = vmul.f32 0.03125, %v589_v61 }
 0x1cc   :  { %v554_v62 = vpop.xlane.xlu0 %553 }
 0x1cd   :  { %v646_v37 = vmul.f32 0.03125, %v554_v62  ;;  %v671_v41 = vsub.f32 %v655_v36, %v663_v0 }
 0x1ce   :  { %v563_v39 = vpop.xlane.xlu1 %562 }
 0x1cf   :  { %v662_v42 = vmul.f32 %v646_v37, %v646_v37  ;;  %v649_v45 = vmul.f32 0.03125, %v563_v39  ;;  %v679_v47 = vmax.f32 %v671_v41, 0.0 }
 0x1d0   :  { %v586_v40 = vpop.xlane.xlu0 %585 }
 0x1d1   :  { %v654_v43 = vmul.f32 0.03125, %v586_v40  ;;  %v665_v34 = vmul.f32 %v649_v45, %v649_v45  ;;  %v687_v1 = vadd.f32 1e-05, %v679_v47 }
 0x1d2   :  { %v560_v59 = vpop.xlane.xlu1 %559 }
 0x1d3   :  { %v670_v56 = vsub.f32 %v654_v43, %v662_v42  ;;  %v648_v46 = vmul.f32 0.03125, %v560_v59 }
 0x1d4   :  { %v592_v38 = vpop.xlane.xlu0 %591 }
 0x1d5   :  { %v678_v63 = vmax.f32 %v670_v56, 0.0  ;;  %v664_v49 = vmul.f32 %v648_v46, %v648_v46  ;;  %v656_v44 = vmul.f32 0.03125, %v592_v38 }
 0x1d6   :  { %v595_v58 = vpop.xlane.xlu1 %594 }
 0x1d7   :  { %v686_v33 = vadd.f32 1e-05, %v678_v63  ;;  %v672_v60 = vsub.f32 %v656_v44, %v664_v49  ;;  %v657_v61 = vmul.f32 0.03125, %v595_v58 }
 0x1d8   :  { %v566_v62 = vpop.xlane.xlu0 %565 }
 0x1d9   :  { %v680_v17 = vmax.f32 %v672_v60, 0.0  ;;  %v673_v0 = vsub.f32 %v657_v61, %v665_v34  ;;  %v650_v36 = vmul.f32 0.03125, %v566_v62  ;;  %1937 = vrsqrt.f32 %v686_v33 }
 0x1da   :  { %v569_v37 = vpop.xlane.xlu1 %568  ;;  %1939 = vrsqrt.f32 %v687_v1 }
 0x1db   :  { %v681_v39 = vmax.f32 %v673_v0, 0.0  ;;  %v651_v40 = vmul.f32 0.03125, %v569_v37  ;;  %v688_v42 = vadd.f32 1e-05, %v680_v17  ;;  %v666_v41 = vmul.f32 %v650_v36, %v650_v36 }
 0x1dc   :  { %v598_v43 = vpop.xlane.xlu0 %597 }
 0x1dd   :  { %v658_v59 = vmul.f32 0.03125, %v598_v43  ;;  %v689_v56 = vadd.f32 1e-05, %v681_v39  ;;  %v667_v45 = vmul.f32 %v651_v40, %v651_v40  ;;  %1941 = vrsqrt.f32 %v688_v42 }
 0x1de   :  { %v601_v46 = vpop.xlane.xlu1 %600 }
 0x1df   :  { %v674_v38 = vsub.f32 %v658_v59, %v666_v41  ;;  %v659_v63 = vmul.f32 0.03125, %v601_v46  ;;  %1943 = vrsqrt.f32 %v689_v56 }
 0x1e0   :  { %v572_v49 = vpop.xlane.xlu0 %571 }
 0x1e1   :  { %v682_v47 = vmax.f32 %v674_v38, 0.0  ;;  %v675_v44 = vsub.f32 %v659_v63, %v667_v45  ;;  %v652_v34 = vmul.f32 0.03125, %v572_v49 }
 0x1e2   :  { %v575_v58 = vpop.xlane.xlu1 %574 }
 0x1e3   :  { %v690_v33 = vadd.f32 1e-05, %v682_v47  ;;  %v683_v60 = vmax.f32 %v675_v44, 0.0  ;;  %v653_v61 = vmul.f32 0.03125, %v575_v58  ;;  %v668_v62 = vmul.f32 %v652_v34, %v652_v34 }
 0x1e4   :  { %v604_v17 = vpop.xlane.xlu0 %603 }
 0x1e5   :  { %1945 = vrsqrt.f32 %v690_v33  ;;  %v691_v1 = vadd.f32 1e-05, %v683_v60  ;;  %v660_v0 = vmul.f32 0.03125, %v604_v17  ;;  %v669_v37 = vmul.f32 %v653_v61, %v653_v61 }
 0x1e6   :  { %v607_v36 = vpop.xlane.xlu1 %606  ;;  %v1938_v42 = vpop.eup %1937 }
 0x1e7   :  { %1947 = vrsqrt.f32 %v691_v1  ;;  %v676_v39 = vsub.f32 %v660_v0, %v668_v62  ;;  %v661_v40 = vmul.f32 0.03125, %v607_v36  ;;  %v1940_v56 = vpop.eup %1939 }
 0x1e8   :  { %v624_v43 = vpop.xlane.xlu0 %623 }
 0x1e9   :  { %v684_v41 = vmax.f32 %v676_v39, 0.0  ;;  %v677_v59 = vsub.f32 %v661_v40, %v669_v37  ;;  %v702_v46 = vmul.f32 %v1938_v42, %v624_v43 }
 0x1ea   :  { %v627_v45 = vpop.xlane.xlu1 %626  ;;  %v1942_v34 = vpop.eup %1941 }
 0x1eb   :  { %v692_v38 = vadd.f32 1e-05, %v684_v41  ;;  %v685_v63 = vmax.f32 %v677_v59, 0.0  ;;  %v716_v49 = vadd.f32 %v2286_v35, %v702_v46  ;;  %v703_v47 = vmul.f32 %v1940_v56, %v627_v45 }
 0x1ec   :  { %v630_v44 = vpop.xlane.xlu0 %629  ;;  %v1944_v1 = vpop.eup %1943 }
 0x1ed   :  { %1949 = vrsqrt.f32 %v692_v38  ;;  %v693_v58 = vadd.f32 1e-05, %v685_v63  ;;  %v732_v33 = vsub.f32 %v716_v49, %v2414_v50  ;;  %805 = vst.msk [vmem:[%s2866_s7] sm:$0xff] %vm804_vm1, %v716_v49  ;;  %v717_v60 = vadd.f32 %v2286_v35, %v703_v47 }
 0x1ee   :  { %v704_v61 = vmul.f32 %v1942_v34, %v630_v44  ;;  %v633_v17 = vpop.xlane.xlu1 %632 }
 0x1ef   :  { %1951 = vrsqrt.f32 %v693_v58  ;;  %v2467_v62 = vand.u32 2147483647, %v732_v33  ;;  %v733_v0 = vsub.f32 %v717_v60, %v2407_v48  ;;  %806 = vst.msk [vmem:[%s2866_s7 + $0x8] sm:$0xff] %vm804_vm1, %v717_v60  ;;  %v705_v36 = vmul.f32 %v1944_v1, %v633_v17 }
 0x1f0   :  { %v718_v50 = vadd.f32 %v2286_v35, %v704_v61  ;;  %v636_v43 = vpop.xlane.xlu0 %635  ;;  %v756_v44 = vmul.f32 0.5, %v732_v33 }
 0x1f1   :  { %v788_v37 = vmul.f32 10.0, %v2467_v62  ;;  %v741_v39 = vand.u32 2147483647, %v733_v0  ;;  %v719_v48 = vadd.f32 %v2286_v35, %v705_v36  ;;  %v757_v60 = vmul.f32 0.5, %v733_v0 }
 0x1f2   :  { %v1946_v40 = vpop.eup %1945  ;;  %v734_v42 = vsub.f32 %v718_v50, %v2419_v51  ;;  %807 = vst.msk [vmem:[%s2866_s7 + $0x10] sm:$0xff] %vm804_vm1, %v718_v50  ;;  %v639_v41 = vpop.xlane.xlu1 %638  ;;  %v764_v50 = vmul.f32 %v756_v44, %v732_v33  ;;  %vm748_vm2 = vcmp.lt.f32.partialorder %v2467_v62, 1.0 }
 0x1f3   :  { %1953 = vtanh.f32 %v788_v37  ;;  %v789_v59 = vmul.f32 10.0, %v741_v39  ;;  %v706_v46 = vmul.f32 %v1946_v40, %v636_v43  ;;  %v735_v38 = vsub.f32 %v719_v48, %v2433_v53  ;;  %808 = vst.msk [vmem:[%s2866_s7 + $0x18] sm:$0xff] %vm804_vm1, %v719_v48 }
 0x1f4   :  { %v1948_v56 = vpop.eup %1947  ;;  %v2482_v45 = vand.u32 2147483647, %v734_v42  ;;  %v642_v40 = vpop.xlane.xlu0 %641  ;;  %v1593_v33 = vadd.f32 -0.5, %v741_v39  ;;  %vm749_vm3 = vcmp.lt.f32.partialorder %v741_v39, 1.0 }
 0x1f5   :  { %1955 = vtanh.f32 %v789_v59  ;;  %v720_v51 = vadd.f32 %v2286_v35, %v706_v46  ;;  %v707_v63 = vmul.f32 %v1948_v56, %v639_v41  ;;  %v2491_v47 = vand.u32 2147483647, %v735_v38 }
 0x1f6   :  { %v790_v49 = vmul.f32 10.0, %v2482_v45  ;;  %v645_v58 = vpop.xlane.xlu1 %644  ;;  %v758_v41 = vmul.f32 0.5, %v734_v42  ;;  %v1592_v46 = vadd.f32 -0.5, %v2467_v62  ;;  %vm750_vm4 = vcmp.lt.f32.partialorder %v2482_v45, 1.0 }
 0x1f7   :  { %v736_v34 = vsub.f32 %v720_v51, %v2428_v52  ;;  %809 = vst.msk [vmem:[%s2866_s7 + $0x20] sm:$0xff] %vm804_vm1, %v720_v51  ;;  %v721_v53 = vadd.f32 %v2286_v35, %v707_v63  ;;  %v791_v61 = vmul.f32 10.0, %v2491_v47  ;;  %v759_v63 = vmul.f32 0.5, %v735_v38 }
 0x1f8   :  { %1957 = vtanh.f32 %v790_v49  ;;  %vm751_vm5 = vcmp.lt.f32.partialorder %v2491_v47, 1.0 }
 0x1f9   :  { %v2500_v17 = vand.u32 2147483647, %v736_v34  ;;  %v2503_v1 = vsub.f32 %v721_v53, %v2447_v55  ;;  %810 = vst.msk [vmem:[%s2866_s7 + $0x28] sm:$0xff] %vm804_vm1, %v721_v53  ;;  %1959 = vtanh.f32 %v791_v61  ;;  %v765_v55 = vmul.f32 %v757_v60, %v733_v0  ;;  %v830_v60 = vpop.permute.xlu0 %829 }
 0x1fa   :  { %v1950_v52 = vpop.eup %1949  ;;  %v832_v48 = vpop.permute.xlu1 %831  ;;  %v766_v61 = vmul.f32 %v758_v41, %v734_v42  ;;  %v760_v41 = vmul.f32 0.5, %v736_v34 }
 0x1fb   :  { %v792_v36 = vmul.f32 10.0, %v2500_v17  ;;  %v2511_v37 = vand.u32 2147483647, %v2503_v1  ;;  %v708_v59 = vmul.f32 %v1950_v52, %v642_v40  ;;  %v781_v39 = vsel %vm749_vm3, %v765_v55, %v1593_v33 }
 0x1fc   :  { %v1952_v43 = vpop.eup %1951  ;;  %vm752_vm6 = vcmp.lt.f32.partialorder %v2500_v17, 1.0 }
 0x1fd   :  { %1961 = vtanh.f32 %v792_v36  ;;  %v793_v56 = vmul.f32 10.0, %v2511_v37  ;;  %v709_v51 = vmul.f32 %v1952_v43, %v645_v58  ;;  %v722_v49 = vadd.f32 %v2286_v35, %v708_v59 }
 0x1fe   :  { %v780_v58 = vsel %vm748_vm2, %v764_v50, %v1592_v46  ;;  %v834_v36 = vpop.permute.xlu1 %833  ;;  %v767_v43 = vmul.f32 %v759_v63, %v735_v38  ;;  %v768_v38 = vmul.f32 %v760_v41, %v736_v34  ;;  %v1596_v63 = vadd.f32 -0.5, %v2500_v17 }
 0x1ff   :  { %1963 = vtanh.f32 %v793_v56  ;;  %v723_v44 = vadd.f32 %v2286_v35, %v709_v51  ;;  %v738_v0 = vsub.f32 %v722_v49, %v2442_v54  ;;  %811 = vst.msk [vmem:[%s2866_s7 + $0x30] sm:$0xff] %vm804_vm1, %v722_v49  ;;  %v1594_v54 = vadd.f32 -0.5, %v2482_v45 }
 0x200   :  { %v1954_v53 = vpop.eup %1953  ;;  %v761_v56 = vmul.f32 0.5, %v2503_v1  ;;  %vm753_vm7 = vcmp.lt.f32.partialorder %v2511_v37, 1.0 }
 0x201   :  { %v739_v52 = vsub.f32 %v723_v44, %v2456_v57  ;;  %812 = vst.msk [vmem:[%s2866_s7 + $0x38] sm:$0xff] %vm804_vm1, %v723_v44  ;;  %v813_v42 = vmul.f32 %v1954_v53, %v780_v58  ;;  %v746_v59 = vand.u32 2147483647, %v738_v0  ;;  %v1595_v57 = vadd.f32 -0.5, %v2491_v47 }
 0x202   :  { %v1956_v40 = vpop.eup %1955  ;;  %v782_v44 = vsel %vm750_vm4, %v766_v61, %v1594_v54  ;;  %v769_v47 = vmul.f32 %v761_v56, %v2503_v1  ;;  %v784_v54 = vsel %vm752_vm6, %v768_v38, %v1596_v63  ;;  %v762_v41 = vmul.f32 0.5, %v738_v0 }
 0x203   :  { %v747_v62 = vand.u32 2147483647, %v739_v52  ;;  %v814_v50 = vmul.f32 %v1956_v40, %v781_v39  ;;  %v853_v46 = vmul.f32 %v830_v60, %v813_v42  ;;  %v794_v51 = vmul.f32 10.0, %v746_v59  ;;  %v836_v60 = vpop.permute.xlu1 %835  ;;  %v838_v40 = vpop.permute.xlu0 %837 }
 0x204   :  { %v783_v58 = vsel %vm751_vm5, %v767_v43, %v1595_v57  ;;  %v1597_v39 = vadd.f32 -0.5, %v2511_v37  ;;  %v770_v56 = vmul.f32 %v762_v41, %v738_v0  ;;  %v1598_v37 = vadd.f32 -0.5, %v746_v59 }
 0x205   :  { %v1958_v55 = vpop.eup %1957  ;;  %v795_v33 = vmul.f32 10.0, %v747_v62  ;;  %v854_v49 = vmul.f32 %v832_v48, %v814_v50  ;;  %869 = vrot.lane.b32.xlu0 %v853_v46, %s2069_s3  ;;  %1965 = vtanh.f32 %v794_v51  ;;  %v763_v46 = vmul.f32 0.5, %v739_v52 }
 0x206   :  { %v815_v45 = vmul.f32 %v1958_v55, %v782_v44  ;;  %v1960_v53 = vpop.eup %1959  ;;  %v785_v17 = vsel %vm753_vm7, %v769_v47, %v1597_v39  ;;  %vm754_vm8 = vcmp.lt.f32.partialorder %v746_v59, 1.0  ;;  %vm755_vm9 = vcmp.lt.f32.partialorder %v747_v62, 1.0 }
 0x207   :  { %1967 = vtanh.f32 %v795_v33  ;;  %871 = vrot.lane.b32.xlu1 %v854_v49, %s2069_s3  ;;  %v816_v61 = vmul.f32 %v1960_v53, %v783_v58  ;;  %v840_v1 = vpop.permute.xlu1 %839  ;;  %v771_v55 = vmul.f32 %v763_v46, %v739_v52  ;;  %v1599_v33 = vadd.f32 -0.5, %v747_v62  ;;  %v842_v38 = vpop.permute.xlu0 %841 }
 0x208   :  { %v855_v48 = vmul.f32 %v834_v36, %v815_v45  ;;  %v786_v44 = vsel %vm754_vm8, %v770_v56, %v1598_v37 }
 0x209   :  { %v856_v42 = vmul.f32 %v836_v60, %v816_v61  ;;  %v787_v53 = vsel %vm755_vm9, %v771_v55, %v1599_v33 }
 0x20a   :  { %v1962_v34 = vpop.eup %1961  ;;  %873 = vrot.lane.b32.xlu0 %v855_v48, %s2069_s3 }
 0x20b   :  { %v817_v50 = vmul.f32 %v1962_v34, %v784_v54  ;;  %875 = vrot.lane.b32.xlu1 %v856_v42, %s2069_s3  ;;  %v844_v58 = vpop.permute.xlu1 %843 }
 0x20c   :  { %v1964_v43 = vpop.eup %1963 }
 0x20d   :  { %v857_v36 = vmul.f32 %v838_v40, %v817_v50  ;;  %v818_v57 = vmul.f32 %v1964_v43, %v785_v17 }
 0x20f   :  { %v858_v51 = vmul.f32 %v840_v1, %v818_v57  ;;  %877 = vrot.lane.b32.xlu0 %v857_v36, %s2069_s3 }
 0x211   :  { %879 = vrot.lane.b32.xlu1 %v858_v51, %s2069_s3 }
 0x212   :  { %v1966_v49 = vpop.eup %1965 }
 0x213   :  { %v819_v63 = vmul.f32 %v1966_v49, %v786_v44 }
 0x214   :  { %v1968_v45 = vpop.eup %1967 }
 0x215   :  { %v820_v60 = vmul.f32 %v1968_v45, %v787_v53  ;;  %v859_v47 = vmul.f32 %v842_v38, %v819_v63 }
 0x217   :  { %v860_v0 = vmul.f32 %v844_v58, %v820_v60  ;;  %881 = vrot.lane.b32.xlu0 %v859_v47, %s2069_s3 }
 0x219   :  { %883 = vrot.lane.b32.xlu1 %v860_v0, %s2069_s3 }
 0x277   :  { %v870_v52 = vpop.permute.xlu0 %869 }
 0x278   :  { %894 = vst.msk [vmem:[%s2866_s7] sm:$0xff] %vm893_vm10, %v870_v52 }
 0x279   :  { %v872_v59 = vpop.permute.xlu1 %871 }
 0x27a   :  { %895 = vst.msk [vmem:[%s2866_s7 + $0x8] sm:$0xff] %vm893_vm10, %v872_v59 }
 0x27c   :  { %v874_v62 = vpop.permute.xlu0 %873 }
 0x27d   :  { %896 = vst.msk [vmem:[%s2866_s7 + $0x10] sm:$0xff] %vm893_vm10, %v874_v62  ;;  %v876_v48 = vpop.permute.xlu1 %875 }
 0x27e   :  { %897 = vst.msk [vmem:[%s2866_s7 + $0x18] sm:$0xff] %vm893_vm10, %v876_v48 }
 0x281   :  { %v878_v61 = vpop.permute.xlu0 %877 }
 0x282   :  { %898 = vst.msk [vmem:[%s2866_s7 + $0x20] sm:$0xff] %vm893_vm10, %v878_v61 }
 0x283   :  { %v880_v39 = vpop.permute.xlu1 %879 }
 0x284   :  { %899 = vst.msk [vmem:[%s2866_s7 + $0x28] sm:$0xff] %vm893_vm10, %v880_v39 }
 0x289   :  { %v882_v34 = vpop.permute.xlu0 %881 }
 0x28a   :  { %900 = vst.msk [vmem:[%s2866_s7 + $0x30] sm:$0xff] %vm893_vm10, %v882_v34 }
 0x28b   :  { %v884_v42 = vpop.permute.xlu1 %883 }
 0x28c   :  { %901 = vst.msk [vmem:[%s2866_s7 + $0x38] sm:$0xff] %vm893_vm10, %v884_v42 }
 0x28d LB: > { %2049 = dma.done.wait [#allocation3 + $0x1], 16  ;;  %s2065_s21 = sphi %s2063_s21, %s907_s21  }
 0x28e   : > { %2050 = vsyncadd [#allocation3 + $0x1], 4294967280  ;;  %s907_s21 = sadd.s32 1, %s2065_s21  }
 0x28f   : > { %p904_p8 = scmp.ge.s32.totalorder %s907_s21, 128  }
 0x290   :  { %1798 = vmatprep.subr.mxu0 (%p904_p8), %v2274_v32  ;;  %1842 = vmatprep.subr.mxu1 (%p904_p8), %v2194_v16 }
 0x291   :  { %906 = sbr.rel (!%p904_p8) target bundleno = 653 (0x28d), region = 272  ;;  %1799 = vmatpush3.msra.mxu0 (%p904_p8), %v2274_v32  ;;  %1843 = vmatpush3.msra.mxu1 (%p904_p8), %v2194_v16  ;;  %v926_v16 = vld [vmem:[#allocation2 + $0xf0] sm:$0xff] (%p904_p8) }
 0x292   :  { %1800 = vmatprep.subr.mxu0 (%p904_p8), %v2269_v31  ;;  %1844 = vmatprep.subr.mxu1 (%p904_p8), %v2189_v15 }
 0x293   :  { %1801 = vmatpush3.msra.mxu0 (%p904_p8), %v2269_v31  ;;  %1845 = vmatpush3.msra.mxu1 (%p904_p8), %v2189_v15  ;;  %v917_v15 = vld [vmem:[#allocation2 + $0x68] sm:$0xff] (%p904_p8) }
 0x294   :  { %1802 = vmatprep.subr.mxu0 (%p904_p8), %v2264_v30  ;;  %1846 = vmatprep.subr.mxu1 (%p904_p8), %v2184_v14 }
 0x295   :  { %1803 = vmatpush3.msra.mxu0 (%p904_p8), %v2264_v30  ;;  %1847 = vmatpush3.msra.mxu1 (%p904_p8), %v2184_v14  ;;  %v925_v14 = vld [vmem:[#allocation2 + $0xe8] sm:$0xff] (%p904_p8) }
 0x296   :  { %1804 = vmatprep.subr.mxu0 %v2259_v29  ;;  %1848 = vmatprep.subr.mxu1 %v2179_v13 }
 0x297   :  { %1805 = vmatpush3.msra.mxu0 %v2259_v29  ;;  %1849 = vmatpush3.msra.mxu1 %v2179_v13  ;;  %v916_v13 = vld [vmem:[#allocation2 + $0x60] sm:$0xff] }
 0x298   :  { %1806 = vmatprep.subr.mxu0 %v2254_v28  ;;  %1850 = vmatprep.subr.mxu1 %v2174_v12 }
 0x299   :  { %1807 = vmatpush3.msra.mxu0 %v2254_v28  ;;  %1851 = vmatpush3.msra.mxu1 %v2174_v12  ;;  %v924_v12 = vld [vmem:[#allocation2 + $0xe0] sm:$0xff] }
 0x29a   :  { %1808 = vmatprep.subr.mxu0 %v2249_v27  ;;  %1852 = vmatprep.subr.mxu1 %v2169_v11 }
 0x29b   :  { %1809 = vmatpush3.msra.mxu0 %v2249_v27  ;;  %1853 = vmatpush3.msra.mxu1 %v2169_v11  ;;  %v915_v11 = vld [vmem:[#allocation2 + $0x58] sm:$0xff] }
 0x29c   :  { %1810 = vmatprep.subr.mxu0 %v2244_v26  ;;  %1854 = vmatprep.subr.mxu1 %v2164_v10 }
 0x29d   :  { %1811 = vmatpush3.msra.mxu0 %v2244_v26  ;;  %1855 = vmatpush3.msra.mxu1 %v2164_v10  ;;  %v914_v10 = vld [vmem:[#allocation2 + $0x50] sm:$0xff] }
 0x29e   :  { %1812 = vmatprep.subr.mxu0 %v2239_v25  ;;  %1856 = vmatprep.subr.mxu1 %v2159_v9  ;;  %v2882_v26 = vld [vmem:[#allocation16_spill] sm:$0xff] }
 0x29f   :  { %1813 = vmatpush3.msra.mxu0 %v2239_v25  ;;  %1857 = vmatpush3.msra.mxu1 %v2159_v9  ;;  %v913_v9 = vld [vmem:[#allocation2 + $0x48] sm:$0xff] }
 0x2a0   :  { %1814 = vmatprep.subr.mxu0 %v2234_v24  ;;  %1858 = vmatprep.subr.mxu1 %v2154_v8 }
 0x2a1   :  { %1815 = vmatpush3.msra.mxu0 %v2234_v24  ;;  %1859 = vmatpush3.msra.mxu1 %v2154_v8  ;;  %v921_v8 = vld [vmem:[#allocation2 + $0xc8] sm:$0xff] }
 0x2a2   :  { %1816 = vmatprep.subr.mxu0 %v2229_v23  ;;  %1860 = vmatprep.subr.mxu1 %v2149_v7 }
 0x2a3   :  { %1817 = vmatpush3.msra.mxu0 %v2229_v23  ;;  %1861 = vmatpush3.msra.mxu1 %v2149_v7  ;;  %v2880_v7 = vld [vmem:[#allocation15_spill] sm:$0xff] }
 0x2a4   :  { %1818 = vmatprep.subr.mxu0 %v2224_v22  ;;  %1862 = vmatprep.subr.mxu1 %v2144_v6 }
 0x2a5   :  { %1819 = vmatpush3.msra.mxu0 %v2224_v22  ;;  %1863 = vmatpush3.msra.mxu1 %v2144_v6  ;;  %v912_v6 = vld [vmem:[#allocation2 + $0x40] sm:$0xff] }
 0x2a6   :  { %1820 = vmatprep.subr.mxu0 %v2219_v21  ;;  %1864 = vmatprep.subr.mxu1 %v2139_v5 }
 0x2a7   :  { %1821 = vmatpush3.msra.mxu0 %v2219_v21  ;;  %1865 = vmatpush3.msra.mxu1 %v2139_v5  ;;  %v920_v5 = vld [vmem:[#allocation2 + $0xc0] sm:$0xff] }
 0x2a8   :  { %1822 = vmatprep.subr.mxu0 %v2214_v20  ;;  %1866 = vmatprep.subr.mxu1 %v2134_v4 }
 0x2a9   :  { %1823 = vmatpush3.msra.mxu0 %v2214_v20  ;;  %1867 = vmatpush3.msra.mxu1 %v2134_v4  ;;  %v2881_v4 = vld [vmem:[#allocation14_spill] sm:$0xff]  ;;  %v919_v20 = vld [vmem:[#allocation2 + $0x78] sm:$0xff] }
 0x2aa   :  { %1824 = vmatprep.subr.mxu0 %v2209_v19  ;;  %1868 = vmatprep.subr.mxu1 %v2129_v3 }
 0x2ab   :  { %1825 = vmatpush3.msra.mxu0 %v2209_v19  ;;  %1869 = vmatpush3.msra.mxu1 %v2129_v3  ;;  %v922_v3 = vld [vmem:[#allocation2 + $0xd0] sm:$0xff]  ;;  %v927_v19 = vld [vmem:[#allocation2 + $0xf8] sm:$0xff] }
 0x2ac   :  { %1826 = vmatprep.subr.mxu0 %v2204_v18  ;;  %1870 = vmatprep.subr.mxu1 %v2124_v2 }
 0x2ad   :  { %1827 = vmatpush3.msra.mxu0 %v2204_v18  ;;  %1871 = vmatpush3.msra.mxu1 %v2124_v2  ;;  %v923_v2 = vld [vmem:[#allocation2 + $0xd8] sm:$0xff]  ;;  %v918_v18 = vld [vmem:[#allocation2 + $0x70] sm:$0xff] }
 0x2ae   :  { %1828 = vmatprep.subr.mxu0 %v2880_v7  ;;  %1872 = vmatprep.subr.mxu1 %v2881_v4 }
 0x2af   :  { %1829 = vmatpush3.msra.mxu0 %v2880_v7  ;;  %1830 = vmatprep.mubr.f32.mxu0 %v920_v5 }
 0x2b0   :  { %1873 = vmatpush3.msra.mxu1 %v2881_v4  ;;  %1874 = vmatprep.mubr.f32.mxu1 %v912_v6 }
 0x2b1   :  { %1831 = vmatmul.mubr.f32.vlgmr.msra.gmra.mxu0 %v921_v8  ;;  %1875 = vmatmul.mubr.f32.vlgmr.msra.gmra.mxu1 %v913_v9 }
 0x2b2   :  { %1833 = vmatprep.mubr.f32.mxu0 %v922_v3  ;;  %1877 = vmatprep.mubr.f32.mxu1 %v914_v10 }
 0x2b5   :  { %1834 = vmatmul.mubr.f32.gmra.mxu0 %v923_v2  ;;  %1878 = vmatmul.mubr.f32.gmra.mxu1 %v915_v11 }
 0x2b6   :  { %1836 = vmatprep.mubr.f32.mxu0 %v924_v12  ;;  %1880 = vmatprep.mubr.f32.mxu1 %v916_v13 }
 0x2b9   :  { %1837 = vmatmul.mubr.f32.gmra.mxu0 %v925_v14  ;;  %1881 = vmatmul.mubr.f32.gmra.mxu1 %v917_v15 }
 0x2ba   :  { %1839 = vmatprep.mubr.f32.mxu0 %v926_v16  ;;  %1883 = vmatprep.mubr.f32.mxu1 %v918_v18 }
 0x2bd   :  { %1840 = vmatmul.mubr.f32.gmra.mxu0 %v927_v19  ;;  %1884 = vmatmul.mubr.f32.gmra.mxu1 %v919_v20 }
 0x371   :  { %v1832_v21 = vpop.f32.mrf.mxu0  ;;  %v1876_v22 = vpop.f32.mrf.mxu1 }
 0x372   :  { %v1105_v23 = vadd.f32 %v1876_v22, %v1832_v21  ;;  %v2883_v22 = vld [vmem:[#allocation17_spill] sm:$0xff] }
 0x373   :  { %v994_v24 = vpop.f32.mrf.mxu0  ;;  %v1099_v25 = vpop.f32.mrf.mxu1 }
 0x374   :  { %v1139_v27 = vadd.f32 %v2882_v26, %v1105_v23  ;;  %v1100_v28 = vadd.f32 %v1099_v25, %v994_v24 }
 0x375   :  { %v1835_v29 = vpop.f32.mrf.mxu0  ;;  %v1879_v30 = vpop.f32.mrf.mxu1 }
 0x376   :  { %1969 = vtanh.f32 %v1139_v27  ;;  %v1138_v31 = vadd.f32 %v2882_v26, %v1100_v28  ;;  %v1115_v32 = vadd.f32 %v1879_v30, %v1835_v29 }
 0x377   :  { %v1004_v54 = vpop.f32.mrf.mxu0  ;;  %v1109_v40 = vpop.f32.mrf.mxu1 }
 0x378   :  { %1971 = vtanh.f32 %v1138_v31  ;;  %v1141_v41 = vadd.f32 %v2882_v26, %v1115_v32  ;;  %v1110_v50 = vadd.f32 %v1109_v40, %v1004_v54 }
 0x379   :  { %v1838_v43 = vpop.f32.mrf.mxu0  ;;  %v1882_v46 = vpop.f32.mrf.mxu1 }
 0x37a   :  { %1973 = vtanh.f32 %v1141_v41  ;;  %v1140_v17 = vadd.f32 %v2882_v26, %v1110_v50  ;;  %v1125_v37 = vadd.f32 %v1882_v46, %v1838_v43 }
 0x37b   :  { %v1014_v1 = vpop.f32.mrf.mxu0  ;;  %v1119_v36 = vpop.f32.mrf.mxu1 }
 0x37c   :  { %1975 = vtanh.f32 %v1140_v17  ;;  %v1120_v57 = vadd.f32 %v1119_v36, %v1014_v1  ;;  %v1143_v44 = vadd.f32 %v2882_v26, %v1125_v37  ;;  %v2687_v1 = vld [vmem:[%s2865_s6 + $0x48] sm:$0xff]  ;;  %v2694_v36 = vld [vmem:[%s2865_s6 + $0x40] sm:$0xff]  ;;  %v2722_v37 = vld [vmem:[%s2865_s6 + $0x70] sm:$0xff] }
 0x37d   :  { %v1841_v56 = vpop.f32.mrf.mxu0  ;;  %v1885_v51 = vpop.f32.mrf.mxu1 }
 0x37e   :  { %v1142_v55 = vadd.f32 %v2882_v26, %v1120_v57  ;;  %v1135_v47 = vadd.f32 %v1885_v51, %v1841_v56  ;;  %v2699_v57 = vld [vmem:[%s2865_s6 + $0x50] sm:$0xff]  ;;  %v2708_v56 = vld [vmem:[%s2865_s6 + $0x60] sm:$0xff]  ;;  %v2713_v51 = vld [vmem:[%s2865_s6 + $0x58] sm:$0xff] }
 0x37f   :  { %v1024_v33 = vpop.f32.mrf.mxu0  ;;  %v1129_v49 = vpop.f32.mrf.mxu1 }
 0x380   :  { %1977 = vtanh.f32 %v1142_v55  ;;  %v1130_v38 = vadd.f32 %v1129_v49, %v1024_v33  ;;  %v1145_v39 = vadd.f32 %v2882_v26, %v1135_v47  ;;  %v2727_v55 = vld [vmem:[%s2865_s6 + $0x68] sm:$0xff]  ;;  %v2736_v33 = vld [vmem:[%s2865_s6 + $0x78] sm:$0xff] }
 0x381   :  { %1979 = vtanh.f32 %v1143_v44 }
 0x382   :  { %v1144_v0 = vadd.f32 %v2882_v26, %v1130_v38 }
 0x383   :  { %v1970_v45 = vpop.eup %1969 }
 0x384   :  { %v1157_v63 = vsel %vm551_vm0, %v1970_v45, 0.0  ;;  %v1179_v53 = vmul.f32 %v1970_v45, %v1970_v45  ;;  %1981 = vtanh.f32 %v1144_v0  ;;  %v1211_v25 = vmul.f32 %v1970_v45, %v2883_v22 }
 0x385   :  { %v1972_v58 = vpop.eup %1971  ;;  %1158 = vadd.xlane.f32.xlu0 %v1157_v63  ;;  %1983 = vtanh.f32 %v1145_v39 }
 0x386   :  { %v1189_v60 = vsel %vm551_vm0, %v1179_v53, 0.0  ;;  %v1154_v59 = vsel %vm551_vm0, %v1972_v58, 0.0  ;;  %v1178_v48 = vmul.f32 %v1972_v58, %v1972_v58  ;;  %v1210_v23 = vmul.f32 %v1972_v58, %v2883_v22 }
 0x387   :  { %v1974_v52 = vpop.eup %1973  ;;  %1190 = vadd.xlane.f32.xlu1 %v1189_v60  ;;  %v1221_v28 = vsel %vm551_vm0, %v1211_v25, 0.0 }
 0x388   :  { %v1163_v62 = vsel %vm551_vm0, %v1974_v52, 0.0  ;;  %v1186_v34 = vsel %vm551_vm0, %v1178_v48, 0.0  ;;  %v1181_v6 = vmul.f32 %v1974_v52, %v1974_v52  ;;  %v1218_v26 = vsel %vm551_vm0, %v1210_v23, 0.0 }
 0x389   :  { %v1976_v61 = vpop.eup %1975  ;;  %1155 = vadd.xlane.f32.xlu0 %v1154_v59  ;;  %v1213_v29 = vmul.f32 %v1974_v52, %v2883_v22 }
 0x38a   :  { %v1180_v42 = vmul.f32 %v1976_v61, %v1976_v61  ;;  %v1160_v5 = vsel %vm551_vm0, %v1976_v61, 0.0  ;;  %v1195_v8 = vsel %vm551_vm0, %v1181_v6, 0.0  ;;  %v1212_v27 = vmul.f32 %v1976_v61, %v2883_v22 }
 0x38b   :  { %1164 = vadd.xlane.f32.xlu1 %v1163_v62  ;;  %v1227_v32 = vsel %vm551_vm0, %v1213_v29, 0.0 }
 0x38c   :  { %v1192_v4 = vsel %vm551_vm0, %v1180_v42, 0.0  ;;  %v1224_v30 = vsel %vm551_vm0, %v1212_v27, 0.0 }
 0x38d   :  { %1187 = vadd.xlane.f32.xlu0 %v1186_v34  ;;  %v1978_v7 = vpop.eup %1977 }
 0x38e   :  { %v1166_v9 = vsel %vm551_vm0, %v1978_v7, 0.0  ;;  %v1980_v3 = vpop.eup %1979  ;;  %v1182_v10 = vmul.f32 %v1978_v7, %v1978_v7  ;;  %v1214_v31 = vmul.f32 %v1978_v7, %v2883_v22 }
 0x38f   :  { %1161 = vadd.xlane.f32.xlu1 %v1160_v5  ;;  %v1169_v2 = vsel %vm551_vm0, %v1980_v3, 0.0  ;;  %v1183_v11 = vmul.f32 %v1980_v3, %v1980_v3  ;;  %v1215_v54 = vmul.f32 %v1980_v3, %v2883_v22 }
 0x390   :  { %v1198_v13 = vsel %vm551_vm0, %v1182_v10, 0.0  ;;  %v1230_v40 = vsel %vm551_vm0, %v1214_v31, 0.0 }
 0x391   :  { %1193 = vadd.xlane.f32.xlu0 %v1192_v4  ;;  %v1982_v12 = vpop.eup %1981  ;;  %v1201_v14 = vsel %vm551_vm0, %v1183_v11, 0.0  ;;  %v1233_v50 = vsel %vm551_vm0, %v1215_v54, 0.0 }
 0x392   :  { %v1172_v15 = vsel %vm551_vm0, %v1982_v12, 0.0  ;;  %v1984_v16 = vpop.eup %1983  ;;  %v1184_v18 = vmul.f32 %v1982_v12, %v1982_v12  ;;  %v1216_v41 = vmul.f32 %v1982_v12, %v2883_v22 }
 0x393   :  { %1196 = vadd.xlane.f32.xlu1 %v1195_v8  ;;  %v1175_v19 = vsel %vm551_vm0, %v1984_v16, 0.0  ;;  %v1185_v20 = vmul.f32 %v1984_v16, %v1984_v16  ;;  %v1217_v43 = vmul.f32 %v1984_v16, %v2883_v22 }
 0x394   :  { %v1204_v21 = vsel %vm551_vm0, %v1184_v18, 0.0  ;;  %v1236_v46 = vsel %vm551_vm0, %v1216_v41, 0.0 }
 0x395   :  { %1167 = vadd.xlane.f32.xlu0 %v1166_v9  ;;  %v1207_v24 = vsel %vm551_vm0, %v1185_v20, 0.0  ;;  %v1239_v17 = vsel %vm551_vm0, %v1217_v43, 0.0 }
 0x397   :  { %1170 = vadd.xlane.f32.xlu1 %v1169_v2 }
 0x399   :  { %1199 = vadd.xlane.f32.xlu0 %v1198_v13 }
 0x39b   :  { %1202 = vadd.xlane.f32.xlu1 %v1201_v14 }
 0x39d   :  { %1173 = vadd.xlane.f32.xlu0 %v1172_v15 }
 0x39f   :  { %1176 = vadd.xlane.f32.xlu1 %v1175_v19 }
 0x3a1   :  { %1205 = vadd.xlane.f32.xlu0 %v1204_v21 }
 0x3a3   :  { %1208 = vadd.xlane.f32.xlu1 %v1207_v24 }
 0x3a5   :  { %1219 = vadd.xlane.f32.xlu0 %v1218_v26 }
 0x3a7   :  { %1222 = vadd.xlane.f32.xlu1 %v1221_v28 }
 0x3a9   :  { %1225 = vadd.xlane.f32.xlu0 %v1224_v30 }
 0x3ab   :  { %1228 = vadd.xlane.f32.xlu1 %v1227_v32 }
 0x3ad   :  { %1231 = vadd.xlane.f32.xlu0 %v1230_v40 }
 0x3af   :  { %1234 = vadd.xlane.f32.xlu1 %v1233_v50 }
 0x3b1   :  { %1237 = vadd.xlane.f32.xlu0 %v1236_v46 }
 0x3b3   :  { %1240 = vadd.xlane.f32.xlu1 %v1239_v17 }
 0x3c4   :  { %1420 = vrot.lane.b32.xlu1 %v2687_v1, %s2068_s28 }
 0x3c7   :  { %1418 = vrot.lane.b32.xlu0 %v2694_v36, %s2068_s28 }
 0x3c8   :  { %1422 = vrot.lane.b32.xlu1 %v2699_v57, %s2068_s28 }
 0x3cb   :  { %1426 = vrot.lane.b32.xlu0 %v2708_v56, %s2068_s28 }
 0x3cc   :  { %1424 = vrot.lane.b32.xlu1 %v2713_v51, %s2068_s28 }
 0x3cf   :  { %1430 = vrot.lane.b32.xlu0 %v2722_v37, %s2068_s28 }
 0x3d0   :  { %1428 = vrot.lane.b32.xlu1 %v2727_v55, %s2068_s28 }
 0x3d4   :  { %1432 = vrot.lane.b32.xlu1 %v2736_v33, %s2068_s28 }
 0x40e   :  { %v1159_v49 = vpop.xlane.xlu0 %1158 }
 0x40f   :  { %v1243_v44 = vmul.f32 0.03125, %v1159_v49 }
 0x410   :  { %v1191_v38 = vpop.xlane.xlu1 %1190 }
 0x411   :  { %v1259_v63 = vmul.f32 %v1243_v44, %v1243_v44  ;;  %v1251_v53 = vmul.f32 0.03125, %v1191_v38 }
 0x412   :  { %v1156_v45 = vpop.xlane.xlu0 %1155 }
 0x413   :  { %v1242_v58 = vmul.f32 0.03125, %v1156_v45  ;;  %v1267_v0 = vsub.f32 %v1251_v53, %v1259_v63 }
 0x414   :  { %v1165_v60 = vpop.xlane.xlu1 %1164 }
 0x415   :  { %v1258_v52 = vmul.f32 %v1242_v58, %v1242_v58  ;;  %v1245_v48 = vmul.f32 0.03125, %v1165_v60  ;;  %v1275_v42 = vmax.f32 %v1267_v0, 0.0 }
 0x416   :  { %v1188_v47 = vpop.xlane.xlu0 %1187 }
 0x417   :  { %v1250_v59 = vmul.f32 0.03125, %v1188_v47  ;;  %v1261_v8 = vmul.f32 %v1245_v48, %v1245_v48  ;;  %v1283_v11 = vadd.f32 1e-05, %v1275_v42 }
 0x418   :  { %v1162_v62 = vpop.xlane.xlu1 %1161 }
 0x419   :  { %v1266_v61 = vsub.f32 %v1250_v59, %v1258_v52  ;;  %v1244_v39 = vmul.f32 0.03125, %v1162_v62 }
 0x41a   :  { %v1194_v34 = vpop.xlane.xlu0 %1193 }
 0x41b   :  { %v1274_v5 = vmax.f32 %v1266_v61, 0.0  ;;  %v1260_v6 = vmul.f32 %v1244_v39, %v1244_v39  ;;  %v1252_v7 = vmul.f32 0.03125, %v1194_v34 }
 0x41c   :  { %v1197_v4 = vpop.xlane.xlu1 %1196 }
 0x41d   :  { %v1282_v9 = vadd.f32 1e-05, %v1274_v5  ;;  %v1268_v3 = vsub.f32 %v1252_v7, %v1260_v6  ;;  %v1253_v10 = vmul.f32 0.03125, %v1197_v4 }
 0x41e   :  { %v1168_v2 = vpop.xlane.xlu0 %1167 }
 0x41f   :  { %v1276_v12 = vmax.f32 %v1268_v3, 0.0  ;;  %v1269_v13 = vsub.f32 %v1253_v10, %v1261_v8  ;;  %v1246_v14 = vmul.f32 0.03125, %v1168_v2  ;;  %1985 = vrsqrt.f32 %v1282_v9 }
 0x420   :  { %v1171_v15 = vpop.xlane.xlu1 %1170  ;;  %1987 = vrsqrt.f32 %v1283_v11 }
 0x421   :  { %v1277_v16 = vmax.f32 %v1269_v13, 0.0  ;;  %v1247_v18 = vmul.f32 0.03125, %v1171_v15  ;;  %v1284_v19 = vadd.f32 1e-05, %v1276_v12  ;;  %v1262_v21 = vmul.f32 %v1246_v14, %v1246_v14 }
 0x422   :  { %v1200_v20 = vpop.xlane.xlu0 %1199 }
 0x423   :  { %v1254_v22 = vmul.f32 0.03125, %v1200_v20  ;;  %v1285_v23 = vadd.f32 1e-05, %v1277_v16  ;;  %v1263_v25 = vmul.f32 %v1247_v18, %v1247_v18  ;;  %1989 = vrsqrt.f32 %v1284_v19 }
 0x424   :  { %v1203_v24 = vpop.xlane.xlu1 %1202 }
 0x425   :  { %v1270_v26 = vsub.f32 %v1254_v22, %v1262_v21  ;;  %v1255_v27 = vmul.f32 0.03125, %v1203_v24  ;;  %1991 = vrsqrt.f32 %v1285_v23 }
 0x426   :  { %v1174_v28 = vpop.xlane.xlu0 %1173 }
 0x427   :  { %v1278_v29 = vmax.f32 %v1270_v26, 0.0  ;;  %v1271_v30 = vsub.f32 %v1255_v27, %v1263_v25  ;;  %v1248_v31 = vmul.f32 0.03125, %v1174_v28 }
 0x428   :  { %v1177_v32 = vpop.xlane.xlu1 %1176 }
 0x429   :  { %v1286_v54 = vadd.f32 1e-05, %v1278_v29  ;;  %v1279_v40 = vmax.f32 %v1271_v30, 0.0  ;;  %v1249_v41 = vmul.f32 0.03125, %v1177_v32  ;;  %v1264_v46 = vmul.f32 %v1248_v31, %v1248_v31 }
 0x42a   :  { %v1206_v50 = vpop.xlane.xlu0 %1205 }
 0x42b   :  { %1993 = vrsqrt.f32 %v1286_v54  ;;  %v1287_v43 = vadd.f32 1e-05, %v1279_v40  ;;  %v1256_v17 = vmul.f32 0.03125, %v1206_v50  ;;  %v1265_v44 = vmul.f32 %v1249_v41, %v1249_v41 }
 0x42c   :  { %v1209_v49 = vpop.xlane.xlu1 %1208  ;;  %v1986_v63 = vpop.eup %1985 }
 0x42d   :  { %1995 = vrsqrt.f32 %v1287_v43  ;;  %v1272_v38 = vsub.f32 %v1256_v17, %v1264_v46  ;;  %v1257_v45 = vmul.f32 0.03125, %v1209_v49  ;;  %v1988_v0 = vpop.eup %1987 }
 0x42e   :  { %v1220_v53 = vpop.xlane.xlu0 %1219 }
 0x42f   :  { %v1280_v58 = vmax.f32 %v1272_v38, 0.0  ;;  %v1273_v60 = vsub.f32 %v1257_v45, %v1265_v44  ;;  %v1298_v47 = vmul.f32 %v1986_v63, %v1220_v53 }
 0x430   :  { %v1223_v52 = vpop.xlane.xlu1 %1222  ;;  %v1990_v34 = vpop.eup %1989 }
 0x431   :  { %v1288_v59 = vadd.f32 1e-05, %v1280_v58  ;;  %v1281_v62 = vmax.f32 %v1273_v60, 0.0  ;;  %v1306_v48 = vadd.f32 %v2286_v35, %v1298_v47  ;;  %v1299_v61 = vmul.f32 %v1988_v0, %v1223_v52 }
 0x432   :  { %v1226_v39 = vpop.xlane.xlu0 %1225  ;;  %v1992_v8 = vpop.eup %1991 }
 0x433   :  { %1997 = vrsqrt.f32 %v1288_v59  ;;  %v1289_v42 = vadd.f32 1e-05, %v1281_v62  ;;  %v1322_v5 = vsub.f32 %v1306_v48, %v2694_v36  ;;  %1394 = vst.msk [vmem:[%s2866_s7 + $0x40] sm:$0xff] %vm804_vm1, %v1306_v48  ;;  %v1307_v6 = vadd.f32 %v2286_v35, %v1299_v61 }
 0x434   :  { %v1300_v7 = vmul.f32 %v1990_v34, %v1226_v39  ;;  %v1229_v4 = vpop.xlane.xlu1 %1228 }
 0x435   :  { %1999 = vrsqrt.f32 %v1289_v42  ;;  %v2747_v9 = vand.u32 2147483647, %v1322_v5  ;;  %v1323_v3 = vsub.f32 %v1307_v6, %v2687_v1  ;;  %1395 = vst.msk [vmem:[%s2866_s7 + $0x48] sm:$0xff] %vm804_vm1, %v1307_v6  ;;  %v1301_v10 = vmul.f32 %v1992_v8, %v1229_v4 }
 0x436   :  { %v1308_v36 = vadd.f32 %v2286_v35, %v1300_v7  ;;  %v1232_v14 = vpop.xlane.xlu0 %1231  ;;  %v1346_v25 = vmul.f32 0.5, %v1322_v5 }
 0x437   :  { %v1378_v2 = vmul.f32 10.0, %v2747_v9  ;;  %v1331_v11 = vand.u32 2147483647, %v1323_v3  ;;  %v1309_v1 = vadd.f32 %v2286_v35, %v1301_v10  ;;  %v1347_v28 = vmul.f32 0.5, %v1323_v3 }
 0x438   :  { %v1994_v12 = vpop.eup %1993  ;;  %v1324_v13 = vsub.f32 %v1308_v36, %v2699_v57  ;;  %1396 = vst.msk [vmem:[%s2866_s7 + $0x50] sm:$0xff] %vm804_vm1, %v1308_v36  ;;  %v1235_v15 = vpop.xlane.xlu1 %1234  ;;  %v1354_v32 = vmul.f32 %v1346_v25, %v1322_v5  ;;  %vm1338_vm11 = vcmp.lt.f32.partialorder %v2747_v9, 1.0  ;;  %v1600_v49 = vadd.f32 -0.5, %v2747_v9 }
 0x439   :  { %2001 = vtanh.f32 %v1378_v2  ;;  %v1379_v16 = vmul.f32 10.0, %v1331_v11  ;;  %v1302_v18 = vmul.f32 %v1994_v12, %v1232_v14  ;;  %v1325_v21 = vsub.f32 %v1309_v1, %v2713_v51  ;;  %1397 = vst.msk [vmem:[%s2866_s7 + $0x58] sm:$0xff] %vm804_vm1, %v1309_v1 }
 0x43a   :  { %v1996_v19 = vpop.eup %1995  ;;  %v2762_v20 = vand.u32 2147483647, %v1324_v13  ;;  %v1238_v41 = vpop.xlane.xlu0 %1237  ;;  %v1348_v46 = vmul.f32 0.5, %v1324_v13  ;;  %v1601_v45 = vadd.f32 -0.5, %v1331_v11  ;;  %vm1339_vm12 = vcmp.lt.f32.partialorder %v1331_v11, 1.0 }
 0x43b   :  { %2003 = vtanh.f32 %v1379_v16  ;;  %v1310_v57 = vadd.f32 %v2286_v35, %v1302_v18  ;;  %v1303_v22 = vmul.f32 %v1996_v19, %v1235_v15  ;;  %v2771_v24 = vand.u32 2147483647, %v1325_v21 }
 0x43c   :  { %v1380_v23 = vmul.f32 10.0, %v2762_v20  ;;  %v1241_v27 = vpop.xlane.xlu1 %1240  ;;  %v1349_v63 = vmul.f32 0.5, %v1325_v21  ;;  %v1356_v47 = vmul.f32 %v1348_v46, %v1324_v13  ;;  %v1370_v52 = vsel %vm1338_vm11, %v1354_v32, %v1600_v49 }
 0x43d   :  { %v1326_v26 = vsub.f32 %v1310_v57, %v2708_v56  ;;  %1398 = vst.msk [vmem:[%s2866_s7 + $0x60] sm:$0xff] %vm804_vm1, %v1310_v57  ;;  %v1311_v51 = vadd.f32 %v2286_v35, %v1303_v22  ;;  %v1381_v29 = vmul.f32 10.0, %v2771_v24  ;;  %vm1340_vm13 = vcmp.lt.f32.partialorder %v2762_v20, 1.0 }
 0x43e   :  { %2005 = vtanh.f32 %v1380_v23  ;;  %v1419_v59 = vpop.permute.xlu0 %1418  ;;  %v1357_v34 = vmul.f32 %v1349_v63, %v1325_v21  ;;  %vm1341_vm14 = vcmp.lt.f32.partialorder %v2771_v24, 1.0 }
 0x43f   :  { %v2780_v30 = vand.u32 2147483647, %v1326_v26  ;;  %v2783_v31 = vsub.f32 %v1311_v51, %v2727_v55  ;;  %1399 = vst.msk [vmem:[%s2866_s7 + $0x68] sm:$0xff] %vm804_vm1, %v1311_v51  ;;  %2007 = vtanh.f32 %v1381_v29  ;;  %v1355_v55 = vmul.f32 %v1347_v28, %v1323_v3 }
 0x440   :  { %v1998_v56 = vpop.eup %1997  ;;  %v1421_v50 = vpop.permute.xlu1 %1420  ;;  %v1350_v42 = vmul.f32 0.5, %v1326_v26 }
 0x441   :  { %v1382_v54 = vmul.f32 10.0, %v2780_v30  ;;  %v2791_v40 = vand.u32 2147483647, %v2783_v31  ;;  %v1304_v17 = vmul.f32 %v1998_v56, %v1238_v41  ;;  %v1351_v8 = vmul.f32 0.5, %v2783_v31 }
 0x442   :  { %v2000_v43 = vpop.eup %1999  ;;  %v1358_v11 = vmul.f32 %v1350_v42, %v1326_v26  ;;  %v1604_v13 = vadd.f32 -0.5, %v2780_v30  ;;  %vm1342_vm15 = vcmp.lt.f32.partialorder %v2780_v30, 1.0  ;;  %v1427_v23 = vpop.permute.xlu0 %1426 }
 0x443   :  { %2009 = vtanh.f32 %v1382_v54  ;;  %v1383_v44 = vmul.f32 10.0, %v2791_v40  ;;  %v1305_v38 = vmul.f32 %v2000_v43, %v1241_v27  ;;  %v1312_v53 = vadd.f32 %v2286_v35, %v1304_v17 }
 0x444   :  { %v1423_v61 = vpop.permute.xlu1 %1422  ;;  %v1359_v16 = vmul.f32 %v1351_v8, %v2783_v31  ;;  %vm1343_vm0 = vcmp.lt.f32.partialorder %v2791_v40, 1.0  ;;  %v1374_v22 = vsel %vm1342_vm15, %v1358_v11, %v1604_v13 }
 0x445   :  { %2011 = vtanh.f32 %v1383_v44  ;;  %v1313_v58 = vadd.f32 %v2286_v35, %v1305_v38  ;;  %v1328_v0 = vsub.f32 %v1312_v53, %v2722_v37  ;;  %1400 = vst.msk [vmem:[%s2866_s7 + $0x70] sm:$0xff] %vm804_vm1, %v1312_v53  ;;  %v1371_v35 = vsel %vm1339_vm12, %v1355_v55, %v1601_v45 }
 0x446   :  { %v2002_v60 = vpop.eup %2001  ;;  %v1602_v37 = vadd.f32 -0.5, %v2762_v20  ;;  %v1605_v20 = vadd.f32 -0.5, %v2791_v40  ;;  %v1431_v43 = vpop.permute.xlu0 %1430 }
 0x447   :  { %v1329_v62 = vsub.f32 %v1313_v58, %v2736_v33  ;;  %1401 = vst.msk [vmem:[%s2866_s7 + $0x78] sm:$0xff] %vm804_vm1, %v1313_v58  ;;  %v1402_v48 = vmul.f32 %v2002_v60, %v1370_v52  ;;  %v1336_v5 = vand.u32 2147483647, %v1328_v0  ;;  %v1603_v33 = vadd.f32 -0.5, %v2771_v24 }
 0x448   :  { %v2004_v39 = vpop.eup %2003  ;;  %v1372_v2 = vsel %vm1340_vm13, %v1356_v47, %v1602_v37  ;;  %v1425_v15 = vpop.permute.xlu1 %1424  ;;  %v1352_v24 = vmul.f32 0.5, %v1328_v0  ;;  %v1375_v27 = vsel %vm1343_vm0, %v1359_v16, %v1605_v20 }
 0x449   :  { %v1337_v6 = vand.u32 2147483647, %v1329_v62  ;;  %v1403_v7 = vmul.f32 %v2004_v39, %v1371_v35  ;;  %v1442_v4 = vmul.f32 %v1419_v59, %v1402_v48  ;;  %v1384_v9 = vmul.f32 10.0, %v1336_v5 }
 0x44a   :  { %v1373_v14 = vsel %vm1341_vm14, %v1357_v34, %v1603_v33  ;;  %v1353_v51 = vmul.f32 0.5, %v1329_v62  ;;  %v1360_v31 = vmul.f32 %v1352_v24, %v1328_v0  ;;  %v1606_v32 = vadd.f32 -0.5, %v1336_v5 }
 0x44b   :  { %v2006_v3 = vpop.eup %2005  ;;  %v1385_v36 = vmul.f32 10.0, %v1337_v6  ;;  %v1443_v10 = vmul.f32 %v1421_v50, %v1403_v7  ;;  %1458 = vrot.lane.b32.xlu0 %v1442_v4, %s2069_s3  ;;  %2013 = vtanh.f32 %v1384_v9  ;;  %vm1344_vm1 = vcmp.lt.f32.partialorder %v1336_v5, 1.0 }
 0x44c   :  { %v1404_v12 = vmul.f32 %v2006_v3, %v1372_v2  ;;  %v2008_v1 = vpop.eup %2007  ;;  %v1429_v28 = vpop.permute.xlu1 %1428  ;;  %v1361_v54 = vmul.f32 %v1353_v51, %v1329_v62  ;;  %v1607_v40 = vadd.f32 -0.5, %v1337_v6  ;;  %vm1345_vm2 = vcmp.lt.f32.partialorder %v1337_v6, 1.0 }
 0x44d   :  { %2015 = vtanh.f32 %v1385_v36  ;;  %1460 = vrot.lane.b32.xlu1 %v1443_v10, %s2069_s3  ;;  %v1405_v19 = vmul.f32 %v2008_v1, %v1373_v14  ;;  %v1376_v50 = vsel %vm1344_vm1, %v1360_v31, %v1606_v32 }
 0x44e   :  { %v1444_v18 = vmul.f32 %v1423_v61, %v1404_v12  ;;  %v1377_v17 = vsel %vm1345_vm2, %v1361_v54, %v1607_v40 }
 0x44f   :  { %v1445_v57 = vmul.f32 %v1425_v15, %v1405_v19 }
 0x450   :  { %v2010_v21 = vpop.eup %2009  ;;  %1462 = vrot.lane.b32.xlu0 %v1444_v18, %s2069_s3  ;;  %v1433_v49 = vpop.permute.xlu1 %1432 }
 0x451   :  { %v1406_v25 = vmul.f32 %v2010_v21, %v1374_v22  ;;  %1464 = vrot.lane.b32.xlu1 %v1445_v57, %s2069_s3 }
 0x452   :  { %v2012_v26 = vpop.eup %2011 }
 0x453   :  { %v1446_v29 = vmul.f32 %v1427_v23, %v1406_v25  ;;  %v1407_v30 = vmul.f32 %v2012_v26, %v1375_v27 }
 0x455   :  { %v1447_v56 = vmul.f32 %v1429_v28, %v1407_v30  ;;  %1466 = vrot.lane.b32.xlu0 %v1446_v29, %s2069_s3 }
 0x457   :  { %1468 = vrot.lane.b32.xlu1 %v1447_v56, %s2069_s3 }
 0x458   :  { %v2014_v41 = vpop.eup %2013 }
 0x459   :  { %v1408_v46 = vmul.f32 %v2014_v41, %v1376_v50 }
 0x45a   :  { %v2016_v55 = vpop.eup %2015 }
 0x45b   :  { %v1409_v44 = vmul.f32 %v2016_v55, %v1377_v17  ;;  %v1448_v38 = vmul.f32 %v1431_v43, %v1408_v46 }
 0x45d   :  { %v1449_v45 = vmul.f32 %v1433_v49, %v1409_v44  ;;  %1470 = vrot.lane.b32.xlu0 %v1448_v38, %s2069_s3 }
 0x45f   :  { %1472 = vrot.lane.b32.xlu1 %v1449_v45, %s2069_s3 }
 0x4bd   :  { %v1459_v63 = vpop.permute.xlu0 %1458 }
 0x4be   :  { %1482 = vst.msk [vmem:[%s2866_s7 + $0x40] sm:$0xff] %vm893_vm10, %v1459_v63 }
 0x4bf   :  { %v1461_v53 = vpop.permute.xlu1 %1460 }
 0x4c0   :  { %1483 = vst.msk [vmem:[%s2866_s7 + $0x48] sm:$0xff] %vm893_vm10, %v1461_v53 }
 0x4c2   :  { %v1463_v58 = vpop.permute.xlu0 %1462 }
 0x4c3   :  { %1484 = vst.msk [vmem:[%s2866_s7 + $0x50] sm:$0xff] %vm893_vm10, %v1463_v58  ;;  %v1465_v60 = vpop.permute.xlu1 %1464 }
 0x4c4   :  { %1485 = vst.msk [vmem:[%s2866_s7 + $0x58] sm:$0xff] %vm893_vm10, %v1465_v60 }
 0x4c7   :  { %v1467_v47 = vpop.permute.xlu0 %1466 }
 0x4c8   :  { %1486 = vst.msk [vmem:[%s2866_s7 + $0x60] sm:$0xff] %vm893_vm10, %v1467_v47 }
 0x4c9   :  { %v1469_v0 = vpop.permute.xlu1 %1468 }
 0x4ca   :  { %1487 = vst.msk [vmem:[%s2866_s7 + $0x68] sm:$0xff] %vm893_vm10, %v1469_v0 }
 0x4cf   :  { %v1471_v52 = vpop.permute.xlu0 %1470 }
 0x4d0   :  { %1488 = vst.msk [vmem:[%s2866_s7 + $0x70] sm:$0xff] %vm893_vm10, %v1471_v52 }
 0x4d1   :  { %v1473_v59 = vpop.permute.xlu1 %1472 }
 0x4d2   :  { %1489 = vst.msk [vmem:[%s2866_s7 + $0x78] sm:$0xff] %vm893_vm10, %v1473_v59 }
 0x4d3   :  { %1494 = vsyncmov [#allocation3] }
 0x4d6   :  { %s1495_s11 = vpop.sfrf %1494 }
 0x4d7   :  { %p1608_p9 = scmp.ne.s32.totalorder %s1495_s11, 0 }
 0x4d9   :  { %1499 = shalt.err (%p1608_p9)  }
 0x4da   :  { %1501 = vsyncmov [#allocation3 + $0x1] }
 0x4dd   :  { %s1502_s12 = vpop.sfrf %1501 }
 0x4de   :  { %p1609_p10 = scmp.ne.s32.totalorder %s1502_s12, 0 }
 0x4e0   :  { %1506 = shalt.err (%p1609_p10)  }

</bundles_post_ra>
